<compile_context>
chip_gen: v5e
topology: v5e:2x2
jax: 0.10.0
libtpu: 0.0.40
codegen_flags: <defaults>
</compile_context>

<pallas_src>
import functools

import jax
import jax.numpy as jnp
from jax.experimental import pallas as pl
from jax.experimental.pallas import tpu as pltpu


def transformer_embed_kernel(idx_ref, fused_ref, g_ref, beta_ref, o_ref, *, eps):
    idx = idx_ref[...]                                   # (tn, 1) int32
    tn = idx.shape[0]
    vocab = fused_ref.shape[0]

    # Embedding + Linear gather as a single one-hot matmul (exact row
    # selection; one-hot is exactly representable in bf16).
    iota = jax.lax.broadcasted_iota(jnp.int32, (tn, vocab), 1)
    onehot = (iota == idx).astype(fused_ref.dtype)       # (tn, V)
    y = jnp.dot(onehot, fused_ref[...],
                preferred_element_type=jnp.float32)      # (tn, D) f32

    # LayerNorm over d_model; statistics kept in f32.
    mean = jnp.mean(y, axis=-1, keepdims=True)
    var = jnp.mean(jnp.square(y - mean), axis=-1, keepdims=True)
    y_norm = (y - mean) * jax.lax.rsqrt(var + eps)
    o_ref[...] = (y_norm * g_ref[...] + beta_ref[...]).astype(o_ref.dtype)


def transformer_embed(x, table, w, b, gamma, beta, *, eps=1e-5, tn=256,
                      param_dtype=jnp.bfloat16):
    """x: int [B, S, F]; table: [V, E]; w: [E, D]; b/gamma/beta: [D]."""
    B, S, F = x.shape
    V, E = table.shape
    D = w.shape[1]
    N = B * S * F

    # Eval-mode fusion: fold Linear(E, D) + bias into the embedding table once
    # per call (V rows instead of N tokens), then cast to the MXU dtype.
    fused = (jnp.dot(table.astype(jnp.float32), w.astype(jnp.float32),
                     precision=jax.lax.Precision.HIGHEST)
             + b.reshape(1, D).astype(jnp.float32)).astype(param_dtype)  # [V, D]

    # Row-major token order (batch, seq, feature); pad rows to a tile multiple
    # with a valid index (0) and slice the result back afterwards.
    grid = pl.cdiv(N, tn)
    n_pad = grid * tn
    idx = x.reshape(N).astype(jnp.int32)
    if n_pad != N:
        idx = jnp.pad(idx, (0, n_pad - N))
    idx = idx.reshape(n_pad, 1)

    g2 = gamma.reshape(1, D).astype(jnp.float32)
    b2 = beta.reshape(1, D).astype(jnp.float32)

    cost = pl.CostEstimate(
        flops=2 * n_pad * V * D + 8 * n_pad * D,
        transcendentals=n_pad,
        bytes_accessed=(n_pad * 4 + V * D * fused.dtype.itemsize
                        + 2 * D * 4 + n_pad * D * 4),
    )

    out = pl.pallas_call(
        functools.partial(transformer_embed_kernel, eps=eps),
        out_shape=jax.ShapeDtypeStruct((n_pad, D), jnp.float32),
        grid_spec=pltpu.PrefetchScalarGridSpec(
            num_scalar_prefetch=0,
            grid=(grid,),
            in_specs=[
                pl.BlockSpec((tn, 1), lambda i: (i, 0)),   # token indices
                # Fused [V, D] table resident in VMEM (constant block index ->
                # fetched once).  For large V*D (v7x 64 MiB VMEM) switch to
                # memory_space=pl.ANY + manual DMA row gather.
                pl.BlockSpec((V, D), lambda i: (0, 0)),
                pl.BlockSpec((1, D), lambda i: (0, 0)),    # LayerNorm gamma
                pl.BlockSpec((1, D), lambda i: (0, 0)),    # LayerNorm beta
            ],
            out_specs=pl.BlockSpec((tn, D), lambda i: (i, 0)),
        ),
        compiler_params=pltpu.CompilerParams(
            dimension_semantics=("parallel",)),
        cost_estimate=cost,
    )(idx, fused, g2, b2)

    return out[:N].reshape(B, S, F, D)


def reference(x, table, w, b, gamma, beta, eps=1e-5):
    emb = table[x]                                       # [B, S, F, E]
    y = jnp.einsum("bsfe,ed->bsfd", emb, w,
                   precision=jax.lax.Precision.HIGHEST) + b
    mean = jnp.mean(y, axis=-1, keepdims=True)
    var = jnp.mean(jnp.square(y - mean), axis=-1, keepdims=True)
    return (y - mean) * jax.lax.rsqrt(var + eps) * gamma + beta


if __name__ == "__main__":
    # Module config: emb_map=[(0, V, E)], idx_map=[(0,)]*F, d_model != emb_size
    # so the Linear(E, d_model) + LayerNorm(d_model) path is exercised.
    # N = B*S*F = 512 rows -> grid of 2 parallel steps at tn=256; D=128 keeps
    # the output lane-dense.
    B, S, F = 2, 64, 4          # batch, seq, number of token features
    V, E, D = 50, 32, 128       # vocab, embedding dim (emb_size), d_model

    key = jax.random.PRNGKey(0)
    k_idx, k_tab, k_w, k_b, k_g = jax.random.split(key, 5)

    x = jax.random.randint(k_idx, (B, S, F), 0, V, dtype=jnp.int32)
    table = jax.random.normal(k_tab, (V, E), dtype=jnp.float32)
    w = jax.random.normal(k_w, (E, D), dtype=jnp.float32) * (1.0 / E ** 0.5)
    b = 0.1 * jax.random.normal(k_b, (D,), dtype=jnp.float32)
    gamma = 1.0 + 0.1 * jax.random.normal(k_g, (D,), dtype=jnp.float32)
    beta = jnp.zeros((D,), dtype=jnp.float32)

    ref = reference(x, table, w, b, gamma, beta)

    # bf16 fused-table path (MXU-native on v6e/v7x); LayerNorm stays f32, so
    # the only error is the bf16 rounding of the fused table rows -> loosened
    # tolerance vs the f32 reference.
    out_bf16 = jax.block_until_ready(
        transformer_embed(x, table, w, b, gamma, beta, tn=256,
                          param_dtype=jnp.bfloat16))
    assert out_bf16.shape == (B, S, F, D), out_bf16.shape
    assert jnp.allclose(out_bf16, ref, atol=3e-2, rtol=3e-2), "bf16 mismatch"

    # f32 path: tight numerical check of the kernel structure itself.
    out_f32 = jax.block_until_ready(
        transformer_embed(x, table, w, b, gamma, beta, tn=256,
                          param_dtype=jnp.float32))
    assert jnp.allclose(out_f32, ref, atol=1e-4, rtol=1e-4), "f32 mismatch"

    print("KERNEL_OK")
</pallas_src>

<mosaic_0001>
module attributes {stable_mosaic.version = 11 : i64} {
  func.func @transformer_embed_kernel(%arg0: i32, %arg1: memref<256x1xi32, #tpu.memory_space<vmem>>, %arg2: memref<50x128xbf16, #tpu.memory_space<vmem>>, %arg3: memref<1x128xf32, #tpu.memory_space<vmem>>, %arg4: memref<1x128xf32, #tpu.memory_space<vmem>>, %arg5: memref<256x128xf32, #tpu.memory_space<vmem>>) attributes {dimension_semantics = [#tpu.dimension_semantics<parallel>], iteration_bounds = array<i64: 2>, scalar_prefetch = 0 : i64, scratch_operands = 0 : i64, tpu.core_type = #tpu.core_type<tc>, window_params = [{transform_indices = @transform_0, window_bounds = array<i64: 256, 1>}, {pipeline_mode = #tpu.pipeline_mode<synchronous>, transform_indices = @transform_1, window_bounds = array<i64: 50, 128>}, {pipeline_mode = #tpu.pipeline_mode<synchronous>, transform_indices = @transform_2, window_bounds = array<i64: 1, 128>}, {pipeline_mode = #tpu.pipeline_mode<synchronous>, transform_indices = @transform_3, window_bounds = array<i64: 1, 128>}, {transform_indices = @transform_4, window_bounds = array<i64: 256, 128>}]} {
    %c0 = arith.constant 0 : index
    %c0_0 = arith.constant 0 : index
    %0 = vector.load %arg1[%c0, %c0_0] : memref<256x1xi32, #tpu.memory_space<vmem>>, vector<256x1xi32>
    %1 = tpu.iota {dimensions = array<i32: 1>} : vector<256x50xi32>
    %2 = vector.broadcast %0 : vector<256x1xi32> to vector<256x50xi32>
    %3 = arith.cmpi eq, %1, %2 : vector<256x50xi32>
    %4 = arith.extui %3 : vector<256x50xi1> to vector<256x50xi32>
    %5 = arith.sitofp %4 : vector<256x50xi32> to vector<256x50xf32>
    %6 = arith.truncf %5 : vector<256x50xf32> to vector<256x50xbf16>
    %c0_1 = arith.constant 0 : index
    %c0_2 = arith.constant 0 : index
    %7 = vector.load %arg2[%c0_1, %c0_2] : memref<50x128xbf16, #tpu.memory_space<vmem>>, vector<50x128xbf16>
    %cst = arith.constant dense<0.000000e+00> : vector<256x128xf32>
    %8 = tpu.matmul %6, %7, %cst {dimension_numbers = #tpu.dot_dimension_numbers<[1], [0], [0], [1], [0, 0, 1, 1], [], []>} : vector<256x50xbf16>, vector<50x128xbf16>, vector<256x128xf32> -> vector<256x128xf32>
    %cst_3 = arith.constant dense<0.000000e+00> : vector<256xf32>
    %9 = vector.multi_reduction <add>, %8, %cst_3 [1] : vector<256x128xf32> to vector<256xf32>
    %10 = vector.shape_cast %9 : vector<256xf32> to vector<256x1xf32>
    %cst_4 = arith.constant 1.280000e+02 : f32
    %11 = vector.broadcast %cst_4 : f32 to vector<256x1xf32>
    %12 = arith.divf %10, %11 : vector<256x1xf32>
    %13 = vector.broadcast %12 : vector<256x1xf32> to vector<256x128xf32>
    %14 = arith.subf %8, %13 : vector<256x128xf32>
    %15 = arith.mulf %14, %14 : vector<256x128xf32>
    %cst_5 = arith.constant dense<0.000000e+00> : vector<256xf32>
    %16 = vector.multi_reduction <add>, %15, %cst_5 [1] : vector<256x128xf32> to vector<256xf32>
    %17 = vector.shape_cast %16 : vector<256xf32> to vector<256x1xf32>
    %cst_6 = arith.constant 1.280000e+02 : f32
    %18 = vector.broadcast %cst_6 : f32 to vector<256x1xf32>
    %19 = arith.divf %17, %18 : vector<256x1xf32>
    %20 = vector.broadcast %12 : vector<256x1xf32> to vector<256x128xf32>
    %21 = arith.subf %8, %20 : vector<256x128xf32>
    %cst_7 = arith.constant 9.99999974E-6 : f32
    %22 = vector.broadcast %cst_7 : f32 to vector<256x1xf32>
    %23 = arith.addf %19, %22 : vector<256x1xf32>
    %24 = math.rsqrt %23 : vector<256x1xf32>
    %25 = vector.broadcast %24 : vector<256x1xf32> to vector<256x128xf32>
    %26 = arith.mulf %21, %25 : vector<256x128xf32>
    %c0_8 = arith.constant 0 : index
    %c0_9 = arith.constant 0 : index
    %27 = vector.load %arg3[%c0_8, %c0_9] : memref<1x128xf32, #tpu.memory_space<vmem>>, vector<1x128xf32>
    %28 = vector.broadcast %27 : vector<1x128xf32> to vector<256x128xf32>
    %29 = arith.mulf %26, %28 : vector<256x128xf32>
    %c0_10 = arith.constant 0 : index
    %c0_11 = arith.constant 0 : index
    %30 = vector.load %arg4[%c0_10, %c0_11] : memref<1x128xf32, #tpu.memory_space<vmem>>, vector<1x128xf32>
    %31 = vector.broadcast %30 : vector<1x128xf32> to vector<256x128xf32>
    %32 = arith.addf %29, %31 : vector<256x128xf32>
    %c0_12 = arith.constant 0 : index
    %c0_13 = arith.constant 0 : index
    %33 = vector.load %arg5[%c0_12, %c0_13] : memref<256x128xf32, #tpu.memory_space<vmem>>, vector<256x128xf32>
    tpu.vector_store %arg5[%c0_12, %c0_13], %32 {strides = array<i32>} : memref<256x128xf32, #tpu.memory_space<vmem>>, vector<256x128xf32>,
    return
  }
  func.func @transform_0(%arg0: i32) -> (i32, i32) {
    %c0_i32 = arith.constant 0 : i32
    %c0_i32_0 = arith.constant 0 : i32
    return %arg0, %c0_i32 : i32, i32
  }
  func.func @transform_1(%arg0: i32) -> (i32, i32) {
    %c0_i32 = arith.constant 0 : i32
    %c0_i32_0 = arith.constant 0 : i32
    %c0_i32_1 = arith.constant 0 : i32
    return %c0_i32, %c0_i32_0 : i32, i32
  }
  func.func @transform_2(%arg0: i32) -> (i32, i32) {
    %c0_i32 = arith.constant 0 : i32
    %c0_i32_0 = arith.constant 0 : i32
    %c0_i32_1 = arith.constant 0 : i32
    return %c0_i32, %c0_i32_0 : i32, i32
  }
  func.func @transform_3(%arg0: i32) -> (i32, i32) {
    %c0_i32 = arith.constant 0 : i32
    %c0_i32_0 = arith.constant 0 : i32
    %c0_i32_1 = arith.constant 0 : i32
    return %c0_i32, %c0_i32_0 : i32, i32
  }
  func.func @transform_4(%arg0: i32) -> (i32, i32) {
    %c0_i32 = arith.constant 0 : i32
    %c0_i32_0 = arith.constant 0 : i32
    return %arg0, %c0_i32 : i32, i32
  }
}

</mosaic_0001>

<bundles_post_ra>
// kernel: tpu_custom_call.1
= control target key start
LH: loop header
LB: loop body
LE: loop exit
PB: predicated region body
PF: predicated region fallthrough
CT: control target
= control target key end

     0   :  { %9 = vsyncpa [#allocation3], 0  ;;  %s2727_s0 = inlined_call_operand.vmem [shape: s32[512,1], index: 0, kind: input, shape index: {}]   ;;  %s2728_s1 = inlined_call_operand.vmem [shape: bf16[50,128], index: 1, kind: input, shape index: {}]   ;;  %s2729_s2 = inlined_call_operand.vmem [shape: f32[1,128], index: 2, kind: input, shape index: {}]   ;;  %s2730_s3 = inlined_call_operand.vmem [shape: f32[1,128], index: 3, kind: input, shape index: {}]   ;;  %s2731_s4 = inlined_call_operand.hbm [shape: f32[512,128], index: 4, kind: output, shape index: {}]  }
   0x1   :  { %11 = vsyncpa [#allocation3 + $0x1], 0  ;;  %s1740_s15 = smov 0   ;;  %s1742_s16 = smov 0  }
   0x2   :  { %s1744_s17 = smov 0   ;;  %s1746_s18 = smov 0  }
   0x3 LB: > { %s1761_s19 = sadd.s32 4294967295, %s1708_s18   ;;  %s1441_s20 = sadd.s32 4294967294, %s1708_s18   ;;  %s1708_s18 = sphi %s1746_s18, %s2737_s18   ;;  %s1704_s17 = sphi %s1744_s17, %s2736_s17   ;;  %s1700_s16 = sphi %s1742_s16, %s2735_s16   ;;  %s1696_s15 = sphi %s1740_s15, %s2734_s15  }
   0x4   : > { %s1765_s21 = sadd.s32 1, %s1708_s18   ;;  %s113_s22 = sadd.s32 1, %s1704_s17 }
   0x5   : > { %s110_s23 = ssub.s32 %s1708_s18, %s1765_s21  ;;  %p123_p0 = scmp.ne.s32.totalorder %s1704_s17, %s1700_s16 }
   0x6   : > { %p111_p1 = scmp.eq.s32.totalorder %s110_s23, 0  ;;  %p124_p2 = scmp.eq.s32.totalorder %s1761_s19, 1 }
   0x7   : > { %p129_p3 = scmp.ne.s32.totalorder %s1700_s16, %s1696_s15  ;;  %p130_p4 = scmp.eq.s32.totalorder %s1441_s20, 1 }
   0x8   : > { %s1776_s24 = scalar_select %p111_p1, %s1704_s17, %s113_s22  }
   0x9   : > { %p1778_p5 = por %p124_p2, %p123_p0  ;;  %p1782_p6 = por %p130_p4, %p129_p3 }
   0xa   : > { %p1444_p7 = scmp.ge.s32.totalorder %s1708_s18, 1  ;;  %p166_p8 = scmp.lt.s32.totalorder %s1708_s18, 3 }
   0xc   : > { %p167_p9 = pnand %p1444_p7, %p166_p8 }
   0xd   : > { %s1446_s27 = sshll.u32 (!%p167_p9), %s1761_s19, 5  ;;  %s189_s14 = sand.u32 (!%p167_p9), 1, %s1700_s16  }
   0xe   : > { %170 = sbr.rel (%p167_p9) target bundleno = 674 (0x2a2), region = 36  ;;  %p193_p10 = scmp.lt.s32.totalorder (!%p167_p9), %s1446_s27, 63 }
   0xf   : > { %s1516_s8 = sshll.u32 (!%p167_p9), %s1761_s19, 8  ;;  %s1364_s13 = scalar_lea.sflag (!%p167_p9), [#allocation3], %s189_s14 }
  0x10   : > { %s1375_s11 = scalar_lea.hbm (!%p167_p9), %s2731_s4, %s1516_s8 }
  0x11   : > { %s1378_s12 = sshll.u32 (!%p167_p9), %s1375_s11, 4  ;;  %s1379_s12 = int_to_ptr.hbm [resolvable:$true] %s1378_s12 }
  0x12   : > { %s1660_s20 = sshra.s32 (!%p167_p9), %s1379_s12, 4  ;;  %s1661_s20 = int_to_ptr.hbm [resolvable:$true] %s1660_s20 }
  0x13   : > { %v1710_v0 = vmov 0   ;;  %s2739_s27 = smov (!%p193_p10, %s1446_s27), 63  ;;  %v448_v31 = vld [vmem:[%s2728_s1 + $0x18] sm:$0x1]  ;;  %vm519_vm0 = vcmask 1040384   ;;  %v1515_v37 = vld [vmem:[%s2728_s1 + $0x10] sm:$0xff]  ;;  %v232_v42 = vlaneseq  ;;  %p1667_p0 = scmp.lt.s32.totalorder %s1661_s20, %s2731_s4 }
  0x14   : > { %1575 = vset.pattern.permute.xlu2 %v1710_v0  ;;  %1574 = vset.pattern.permute.xlu1 %v1710_v0  ;;  %s1447_s28 = sshll.u32 %s2739_s27, 3  ;;  %v462_v32 = vunpack.c.l.b16 %v448_v31  ;;  %v1514_v38 = vld [vmem:[%s2728_s1 + $0x8] sm:$0xff]  ;;  %v1513_v39 = vld [vmem:[%s2728_s1] sm:$0xff]  ;;  %v1711_v49 = vmov 0.0   ;;  %vm470_vm3 = vcmask 408576   ;;  %s1662_s22 = scalar_lea.hbm %s1661_s20, 256 }
  0x15   : > { %1573 = vset.pattern.permute.xlu0 %v1710_v0  ;;  %s1792_s5 = scalar_lea.vmem %s2727_s0, %s1447_s28  ;;  %v1838_v45 = vand.u32 127, %v232_v42  ;;  %s1445_s28 = sshll.u32 %s189_s14, 8 }
  0x16   : > { %v204_v1 = vld [vmem:[%s1792_s5 + $0x20] sm:$0xff]  ;;  %v202_v2 = vld [vmem:[%s1792_s5 + $0x10] sm:$0xff]  ;;  %v205_v4 = vld [vmem:[%s1792_s5 + $0x28] sm:$0xff]  ;;  %v466_v35 = vpack.c.b16 %v462_v32, %v462_v32  ;;  %s2235_s29 = scalar_lea.vmem [#allocation2], %s1445_s28  ;;  %p1663_p11 = scmp.ne.s32.totalorder %s1661_s20, %s1662_s22 }
  0x17   : > { %v200_v3 = vld [vmem:[%s1792_s5] sm:$0xff]  ;;  %247 = vperm.xlu2 %1575, %v204_v1   ;;  %241 = vperm.xlu1 %1574, %v202_v2   ;;  %v203_v5 = vld [vmem:[%s1792_s5 + $0x18] sm:$0xff]  ;;  %v201_v6 = vld [vmem:[%s1792_s5 + $0x8] sm:$0xff]  ;;  %s1376_s19 = sshll.u32 %s2235_s29, 4  ;;  %s1666_s28 = scalar_lea.hbm %s2731_s4, 512  ;;  %s1377_s19 = int_to_ptr.vmem [resolvable:$true] %s1376_s19 }
  0x18   : > { %235 = vperm.xlu0 %1573, %v200_v3   ;;  %v208_v7 = vld [vmem:[%s1792_s5 + $0x40] sm:$0xff]  ;;  %v207_v8 = vld [vmem:[%s1792_s5 + $0x38] sm:$0xff]  ;;  %v206_v9 = vld [vmem:[%s1792_s5 + $0x30] sm:$0xff]  ;;  %v521_v36 = vsel %vm519_vm0, %v466_v35, 0  ;;  %p1664_p12 = pnand %p1663_p11, %p1778_p5  ;;  %p1668_p1 = scmp.lt.s32.totalorder %s1666_s28, %s1662_s22 }
  0x19   : > { %v224_v10 = vld [vmem:[%s1792_s5 + $0xc0] sm:$0xff]  ;;  %v217_v11 = vld [vmem:[%s1792_s5 + $0x88] sm:$0xff]  ;;  %v218_v13 = vld [vmem:[%s1792_s5 + $0x90] sm:$0xff]  ;;  %527 = vmatpush.bf16.msra.mxu0 %v521_v36  ;;  %1518 = vmatpush.bf16.msra.mxu2 %v521_v36 }
  0x1a   : > { %v216_v12 = vld [vmem:[%s1792_s5 + $0x80] sm:$0xff]  ;;  %v209_v14 = vld [vmem:[%s1792_s5 + $0x48] sm:$0xff]  ;;  %v227_v16 = vld [vmem:[%s1792_s5 + $0xd8] sm:$0xff]  ;;  %1517 = vmatpush.bf16.msra.mxu1 %v521_v36  ;;  %1519 = vmatpush.bf16.msra.mxu3 %v521_v36  ;;  %p1665_p13 = pneg %p1664_p12  ;;  %p1669_p2 = por %p1668_p1, %p1667_p0 }
  0x1b   : > { %v225_v15 = vld [vmem:[%s1792_s5 + $0xc8] sm:$0xff]  ;;  %v226_v17 = vld [vmem:[%s1792_s5 + $0xd0] sm:$0xff]  ;;  %v219_v18 = vld [vmem:[%s1792_s5 + $0x98] sm:$0xff] }
  0x1c   : > { %v220_v19 = vld [vmem:[%s1792_s5 + $0xa0] sm:$0xff]  ;;  %v211_v20 = vld [vmem:[%s1792_s5 + $0x58] sm:$0xff]  ;;  %v210_v21 = vld [vmem:[%s1792_s5 + $0x50] sm:$0xff]  ;;  %p1670_p3 = pnand %p1669_p2, %p1665_p13 }
  0x1d   : > { %v229_v22 = vld [vmem:[%s1792_s5 + $0xe8] sm:$0xff]  ;;  %v228_v23 = vld [vmem:[%s1792_s5 + $0xe0] sm:$0xff]  ;;  %v222_v25 = vld [vmem:[%s1792_s5 + $0xb0] sm:$0xff]  ;;  %528 = vmatpush.bf16.msra.mxu0 %v1515_v37  ;;  %1521 = vmatpush.bf16.msra.mxu2 %v1515_v37 }
  0x1e   : > { %v221_v24 = vld [vmem:[%s1792_s5 + $0xa8] sm:$0xff]  ;;  %v212_v27 = vld [vmem:[%s1792_s5 + $0x60] sm:$0xff]  ;;  %v231_v28 = vld [vmem:[%s1792_s5 + $0xf8] sm:$0xff]  ;;  %1520 = vmatpush.bf16.msra.mxu1 %v1515_v37  ;;  %1522 = vmatpush.bf16.msra.mxu3 %v1515_v37 }
  0x1f   : > { %250 = vperm.xlu2 %1575, %v205_v4   ;;  %244 = vperm.xlu1 %1574, %v203_v5   ;;  %v213_v26 = vld [vmem:[%s1792_s5 + $0x68] sm:$0xff]  ;;  %v230_v29 = vld [vmem:[%s1792_s5 + $0xf0] sm:$0xff]  ;;  %v223_v30 = vld [vmem:[%s1792_s5 + $0xb8] sm:$0xff] }
  0x20   : > { %238 = vperm.xlu0 %1573, %v201_v6   ;;  %v215_v33 = vld [vmem:[%s1792_s5 + $0x78] sm:$0xff]  ;;  %v214_v34 = vld [vmem:[%s1792_s5 + $0x70] sm:$0xff] }
  0x21   : > { %529 = vmatpush.bf16.msra.mxu0 %v1514_v38  ;;  %1524 = vmatpush.bf16.msra.mxu2 %v1514_v38 }
  0x22   : > { %1523 = vmatpush.bf16.msra.mxu1 %v1514_v38  ;;  %1525 = vmatpush.bf16.msra.mxu3 %v1514_v38 }
  0x25   : > { %530 = vmatpush.bf16.msra.mxu0 %v1513_v39  ;;  %1527 = vmatpush.bf16.msra.mxu2 %v1513_v39 }
  0x26   : > { %1526 = vmatpush.bf16.msra.mxu1 %v1513_v39  ;;  %1528 = vmatpush.bf16.msra.mxu3 %v1513_v39 }
  0x27   : > { %259 = vperm.xlu2 %1575, %v208_v7   ;;  %256 = vperm.xlu1 %1574, %v207_v8  }
  0x28   : > { %253 = vperm.xlu0 %1573, %v206_v9  }
  0x2f   : > { %307 = vperm.xlu2 %1575, %v224_v10   ;;  %286 = vperm.xlu1 %1574, %v217_v11  }
  0x30   : > { %283 = vperm.xlu0 %1573, %v216_v12  }
  0x37   : > { %289 = vperm.xlu2 %1575, %v218_v13   ;;  %262 = vperm.xlu1 %1574, %v209_v14  }
  0x38   : > { %310 = vperm.xlu0 %1573, %v225_v15  }
  0x3f   : > { %316 = vperm.xlu2 %1575, %v227_v16   ;;  %313 = vperm.xlu1 %1574, %v226_v17  }
  0x40   : > { %292 = vperm.xlu0 %1573, %v219_v18  }
  0x47   : > { %295 = vperm.xlu2 %1575, %v220_v19   ;;  %268 = vperm.xlu1 %1574, %v211_v20  }
  0x48   : > { %265 = vperm.xlu0 %1573, %v210_v21  }
  0x4f   : > { %322 = vperm.xlu2 %1575, %v229_v22   ;;  %319 = vperm.xlu1 %1574, %v228_v23  }
  0x50   : > { %298 = vperm.xlu0 %1573, %v221_v24  }
  0x57   : > { %301 = vperm.xlu2 %1575, %v222_v25   ;;  %274 = vperm.xlu1 %1574, %v213_v26  }
  0x58   : > { %271 = vperm.xlu0 %1573, %v212_v27  }
  0x5f   : > { %328 = vperm.xlu2 %1575, %v231_v28   ;;  %325 = vperm.xlu1 %1574, %v230_v29  }
  0x60   : > { %304 = vperm.xlu0 %1573, %v223_v30  }
  0x67   : > { %280 = vperm.xlu1 %1574, %v215_v33  }
  0x68   : > { %277 = vperm.xlu0 %1573, %v214_v34  }
  0x71   : > { %v248_v40 = vpop.permute.xlu2 %247 }
  0x72   : > { %vm334_vm12 = vcmp.eq.s32.totalorder %v1838_v45, %v248_v40 }
  0x73   : > { %v1452_v11 = vsel %vm334_vm12, 1.0, %v1711_v49 }
  0x79   : > { %v251_v41 = vpop.permute.xlu2 %250 }
  0x7a   : > { %vm335_vm13 = vcmp.eq.s32.totalorder %v1838_v45, %v251_v41 }
  0x7b   : > { %v1453_v12 = vsel %vm335_vm13, 1.0, %v1711_v49 }
  0x7c   : > { %v428_v16 = vpack.c.bf16 %v1453_v12, %v1452_v11 }
  0x81   : > { %v260_v46 = vpop.permute.xlu2 %259 }
  0x82   : > { %vm338_vm8 = vcmp.eq.s32.totalorder %v1838_v45, %v260_v46 }
  0x83   : > { %v1456_v3 = vsel %vm338_vm8, 1.0, %v1711_v49 }
  0x89   : > { %v242_v43 = vpop.permute.xlu1 %241  ;;  %v308_v54 = vpop.permute.xlu2 %307 }
  0x8a   : > { %v236_v44 = vpop.permute.xlu0 %235  ;;  %vm332_vm5 = vcmp.eq.s32.totalorder %v1838_v45, %v242_v43  ;;  %vm354_vm9 = vcmp.eq.s32.totalorder %v1838_v45, %v308_v54 }
  0x8b   : > { %vm330_vm1 = vcmp.eq.s32.totalorder %v1838_v45, %v236_v44  ;;  %v1450_v60 = vsel %vm332_vm5, 1.0, %v1711_v49  ;;  %v1472_v5 = vsel %vm354_vm9, 1.0, %v1711_v49 }
  0x8c   : > { %v1448_v50 = vsel %vm330_vm1, 1.0, %v1711_v49 }
  0x91   : > { %v245_v47 = vpop.permute.xlu1 %244  ;;  %v290_v61 = vpop.permute.xlu2 %289 }
  0x92   : > { %v239_v48 = vpop.permute.xlu0 %238  ;;  %vm333_vm4 = vcmp.eq.s32.totalorder %v1838_v45, %v245_v47  ;;  %vm348_vm14 = vcmp.eq.s32.totalorder %v1838_v45, %v290_v61 }
  0x93   : > { %vm331_vm2 = vcmp.eq.s32.totalorder %v1838_v45, %v239_v48  ;;  %v1451_v57 = vsel %vm333_vm4, 1.0, %v1711_v49  ;;  %v1466_v14 = vsel %vm348_vm14, 1.0, %v1711_v49 }
  0x94   : > { %v1449_v51 = vsel %vm331_vm2, 1.0, %v1711_v49  ;;  %v427_v63 = vpack.c.bf16 %v1451_v57, %v1450_v60 }
  0x95   : > { %v426_v52 = vpack.c.bf16 %v1449_v51, %v1448_v50 }
  0x97   : > { %1492 = vmatmul.msk.bf16.vlgmr.msra.gmra.mxu0 %vm470_vm3, %v426_v52 }
  0x99   : > { %v1845_v53 = vpop.permute.xlu1 %256  ;;  %v317_v9 = vpop.permute.xlu2 %316 }
  0x9a   : > { %v1847_v55 = vpop.permute.xlu0 %253  ;;  %vm357_vm1 = vcmp.eq.s32.totalorder %v1838_v45, %v317_v9  ;;  %vm337_vm5 = vcmp.eq.s32.totalorder %v1838_v45, %v1845_v53 }
  0x9b   : > { %v1475_v23 = vsel %vm357_vm1, 1.0, %v1711_v49  ;;  %v1455_v28 = vsel %vm337_vm5, 1.0, %v1711_v49 }
  0xa1   : > { %v287_v56 = vpop.permute.xlu1 %286  ;;  %v296_v18 = vpop.permute.xlu2 %295 }
  0xa2   : > { %vm347_vm6 = vcmp.eq.s32.totalorder %v1838_v45, %v287_v56  ;;  %v284_v58 = vpop.permute.xlu0 %283 }
  0xa3   : > { %v1465_v59 = vsel %vm347_vm6, 1.0, %v1711_v49  ;;  %vm346_vm7 = vcmp.eq.s32.totalorder %v1838_v45, %v284_v58  ;;  %vm336_vm6 = vcmp.eq.s32.totalorder %v1838_v45, %v1847_v55 }
  0xa4   : > { %v1464_v62 = vsel %vm346_vm7, 1.0, %v1711_v49  ;;  %vm350_vm7 = vcmp.eq.s32.totalorder %v1838_v45, %v296_v18  ;;  %v1454_v29 = vsel %vm336_vm6, 1.0, %v1711_v49 }
  0xa5   : > { %v434_v0 = vpack.c.bf16 %v1465_v59, %v1464_v62  ;;  %v1468_v32 = vsel %vm350_vm7, 1.0, %v1711_v49  ;;  %v429_v34 = vpack.c.bf16 %v1455_v28, %v1454_v29 }
  0xa7   : > { %1493 = vmatmul.msk.bf16.gmra.mxu0 %vm470_vm3, %v427_v63  ;;  %1500 = vmatmul.msk.bf16.vlgmr.msra.gmra.mxu2 %vm470_vm3, %v434_v0 }
  0xa9   : > { %v263_v1 = vpop.permute.xlu1 %262  ;;  %v323_v30 = vpop.permute.xlu2 %322 }
  0xaa   : > { %vm339_vm10 = vcmp.eq.s32.totalorder %v1838_v45, %v263_v1  ;;  %v311_v2 = vpop.permute.xlu0 %310 }
  0xab   : > { %v1457_v4 = vsel %vm339_vm10, 1.0, %v1711_v49  ;;  %vm355_vm11 = vcmp.eq.s32.totalorder %v1838_v45, %v311_v2  ;;  %vm359_vm10 = vcmp.eq.s32.totalorder %v1838_v45, %v323_v30 }
  0xac   : > { %v430_v6 = vpack.c.bf16 %v1457_v4, %v1456_v3  ;;  %v1473_v7 = vsel %vm355_vm11, 1.0, %v1711_v49  ;;  %v1477_v40 = vsel %vm359_vm10, 1.0, %v1711_v49 }
  0xad   : > { %v438_v8 = vpack.c.bf16 %v1473_v7, %v1472_v5 }
  0xae   : > { %1496 = vmatmul.msk.bf16.vlgmr.msra.gmra.mxu1 %vm470_vm3, %v430_v6 }
  0xaf   : > { %1504 = vmatmul.msk.bf16.vlgmr.msra.gmra.mxu3 %vm470_vm3, %v438_v8 }
  0xb1   : > { %v314_v10 = vpop.permute.xlu1 %313  ;;  %v302_v41 = vpop.permute.xlu2 %301 }
  0xb2   : > { %v293_v13 = vpop.permute.xlu0 %292  ;;  %vm356_vm0 = vcmp.eq.s32.totalorder %v1838_v45, %v314_v10  ;;  %vm352_vm13 = vcmp.eq.s32.totalorder %v1838_v45, %v302_v41 }
  0xb3   : > { %vm349_vm15 = vcmp.eq.s32.totalorder %v1838_v45, %v293_v13  ;;  %v1474_v20 = vsel %vm356_vm0, 1.0, %v1711_v49  ;;  %v1470_v48 = vsel %vm352_vm13, 1.0, %v1711_v49 }
  0xb4   : > { %v1467_v15 = vsel %vm349_vm15, 1.0, %v1711_v49  ;;  %v439_v25 = vpack.c.bf16 %v1475_v23, %v1474_v20 }
  0xb5   : > { %v435_v17 = vpack.c.bf16 %v1467_v15, %v1466_v14 }
  0xb7   : > { %1494 = vmatmul.msk.bf16.gmra.mxu0 %vm470_vm3, %v428_v16  ;;  %1501 = vmatmul.msk.bf16.gmra.mxu2 %vm470_vm3, %v435_v17 }
  0xb9   : > { %v269_v19 = vpop.permute.xlu1 %268  ;;  %v329_v52 = vpop.permute.xlu2 %328 }
  0xba   : > { %vm341_vm2 = vcmp.eq.s32.totalorder %v1838_v45, %v269_v19  ;;  %v266_v21 = vpop.permute.xlu0 %265  ;;  %vm361_vm0 = vcmp.eq.s32.totalorder %v1838_v45, %v329_v52 }
  0xbb   : > { %v1459_v22 = vsel %vm341_vm2, 1.0, %v1711_v49  ;;  %vm340_vm4 = vcmp.eq.s32.totalorder %v1838_v45, %v266_v21  ;;  %v1479_v57 = vsel %vm361_vm0, 1.0, %v1711_v49 }
  0xbc   : > { %v1458_v24 = vsel %vm340_vm4, 1.0, %v1711_v49 }
  0xbd   : > { %v431_v26 = vpack.c.bf16 %v1459_v22, %v1458_v24  ;;  %v1712_v22 = vmov 128.0  }
  0xbe   : > { %1578 = vrcp.f32 %v1712_v22 }
  0xbf   : > { %1497 = vmatmul.msk.bf16.gmra.mxu1 %vm470_vm3, %v431_v26  ;;  %1505 = vmatmul.msk.bf16.gmra.mxu3 %vm470_vm3, %v439_v25 }
  0xc1   : > { %v320_v27 = vpop.permute.xlu1 %319 }
  0xc2   : > { %v299_v31 = vpop.permute.xlu0 %298  ;;  %vm358_vm9 = vcmp.eq.s32.totalorder %v1838_v45, %v320_v27 }
  0xc3   : > { %vm351_vm8 = vcmp.eq.s32.totalorder %v1838_v45, %v299_v31  ;;  %v1476_v37 = vsel %vm358_vm9, 1.0, %v1711_v49 }
  0xc4   : > { %v1469_v33 = vsel %vm351_vm8, 1.0, %v1711_v49  ;;  %v440_v43 = vpack.c.bf16 %v1477_v40, %v1476_v37  ;;  %v1579_v24 = vpop.eup %1578 }
  0xc5   : > { %v436_v35 = vpack.c.bf16 %v1469_v33, %v1468_v32  ;;  %v677_v26 = vmul.f32 128.0, %v1579_v24 }
  0xc7   : > { %1495 = vmatmul.msk.bf16.gmra.mxu0 %vm470_vm3, %v429_v34  ;;  %1502 = vmatmul.msk.bf16.gmra.mxu2 %vm470_vm3, %v436_v35  ;;  %v678_v29 = vsub.f32 1.0, %v677_v26 }
  0xc9   : > { %v275_v36 = vpop.permute.xlu1 %274  ;;  %v679_v30 = vmul.f32 %v1579_v24, %v678_v29 }
  0xca   : > { %vm343_vm11 = vcmp.eq.s32.totalorder %v1838_v45, %v275_v36  ;;  %v272_v38 = vpop.permute.xlu0 %271 }
  0xcb   : > { %v1461_v39 = vsel %vm343_vm11, 1.0, %v1711_v49  ;;  %vm342_vm12 = vcmp.eq.s32.totalorder %v1838_v45, %v272_v38  ;;  %v680_v32 = vadd.f32 %v1579_v24, %v679_v30 }
  0xcc   : > { %v1460_v42 = vsel %vm342_vm12, 1.0, %v1711_v49 }
  0xcd   : > { %v432_v44 = vpack.c.bf16 %v1461_v39, %v1460_v42 }
  0xcf   : > { %1498 = vmatmul.msk.bf16.gmra.mxu1 %vm470_vm3, %v432_v44  ;;  %1506 = vmatmul.msk.bf16.gmra.mxu3 %vm470_vm3, %v440_v43 }
  0xd1   : > { %v326_v46 = vpop.permute.xlu1 %325 }
  0xd2   : > { %v305_v47 = vpop.permute.xlu0 %304  ;;  %vm360_vm15 = vcmp.eq.s32.totalorder %v1838_v45, %v326_v46 }
  0xd3   : > { %vm353_vm14 = vcmp.eq.s32.totalorder %v1838_v45, %v305_v47  ;;  %v1478_v54 = vsel %vm360_vm15, 1.0, %v1711_v49 }
  0xd4   : > { %v1471_v50 = vsel %vm353_vm14, 1.0, %v1711_v49  ;;  %v441_v59 = vpack.c.bf16 %v1479_v57, %v1478_v54 }
  0xd5   : > { %v437_v51 = vpack.c.bf16 %v1471_v50, %v1470_v48 }
  0xd7   : > { %1503 = vmatmul.msk.bf16.gmra.mxu2 %vm470_vm3, %v437_v51 }
  0xd9   : > { %v281_v53 = vpop.permute.xlu1 %280 }
  0xda   : > { %vm345_vm1 = vcmp.eq.s32.totalorder %v1838_v45, %v281_v53  ;;  %v278_v55 = vpop.permute.xlu0 %277 }
  0xdb   : > { %v1463_v56 = vsel %vm345_vm1, 1.0, %v1711_v49  ;;  %vm344_vm2 = vcmp.eq.s32.totalorder %v1838_v45, %v278_v55 }
  0xdc   : > { %v1462_v58 = vsel %vm344_vm2, 1.0, %v1711_v49 }
  0xdd   : > { %v433_v60 = vpack.c.bf16 %v1463_v56, %v1462_v58 }
  0xdf   : > { %1499 = vmatmul.msk.bf16.gmra.mxu1 %vm470_vm3, %v433_v60  ;;  %1507 = vmatmul.msk.bf16.gmra.mxu3 %vm470_vm3, %v441_v59  ;;  %vm681_vm3 = vweird.f32 %v1579_v24 }
  0xe0   : > { %v2022_v33 = vsel %vm681_vm3, %v1579_v24, %v680_v32 }
 0x114   : > { %v1926_v61 = vpop.f32.mrf.mxu0 }
 0x115   : > { %612 = vadd.xlane.f32.xlu2 %v1926_v61 }
 0x11c   : > { %v1937_v49 = vpop.f32.mrf.mxu0 }
 0x124   : > { %v1950_v3 = vpop.f32.mrf.mxu0 }
 0x12a   : > { %v1929_v62 = vpop.f32.mrf.mxu2 }
 0x12b   : > { %644 = vadd.xlane.f32.xlu2 %v1929_v62  ;;  %v1932_v63 = vpop.f32.mrf.mxu1 }
 0x12c   : > { %628 = vadd.xlane.f32.xlu0 %v1932_v63  ;;  %v1961_v7 = vpop.f32.mrf.mxu0 }
 0x132   : > { %v1935_v45 = vpop.f32.mrf.mxu3  ;;  %v1941_v0 = vpop.f32.mrf.mxu2 }
 0x133   : > { %660 = vadd.xlane.f32.xlu1 %v1935_v45  ;;  %v1943_v1 = vpop.f32.mrf.mxu1 }
 0x134   : > { %614 = vadd.xlane.f32.xlu0 %v1937_v49  ;;  %v1972_v11 = vpop.f32.mrf.mxu0 }
 0x13a   : > { %v1945_v2 = vpop.f32.mrf.mxu3  ;;  %v1952_v4 = vpop.f32.mrf.mxu2 }
 0x13b   : > { %630 = vadd.xlane.f32.xlu1 %v1943_v1  ;;  %662 = vadd.xlane.f32.xlu2 %v1945_v2 }
 0x13c   : > { %646 = vadd.xlane.f32.xlu0 %v1941_v0  ;;  %v1954_v5 = vpop.f32.mrf.mxu1  ;;  %v1983_v15 = vpop.f32.mrf.mxu0 }
 0x142   : > { %v1956_v6 = vpop.f32.mrf.mxu3  ;;  %v1963_v8 = vpop.f32.mrf.mxu2 }
 0x143   : > { %616 = vadd.xlane.f32.xlu1 %v1950_v3  ;;  %632 = vadd.xlane.f32.xlu2 %v1954_v5 }
 0x144   : > { %664 = vadd.xlane.f32.xlu0 %v1956_v6  ;;  %v1965_v9 = vpop.f32.mrf.mxu1  ;;  %v1999_v20 = vpop.f32.mrf.mxu0 }
 0x14a   : > { %v1970_v10 = vpop.f32.mrf.mxu3  ;;  %v1974_v12 = vpop.f32.mrf.mxu2 }
 0x14b   : > { %648 = vadd.xlane.f32.xlu1 %v1952_v4  ;;  %618 = vadd.xlane.f32.xlu2 %v1961_v7 }
 0x14c   : > { %634 = vadd.xlane.f32.xlu0 %v1965_v9  ;;  %v1979_v13 = vpop.f32.mrf.mxu1  ;;  %v2013_v27 = vpop.f32.mrf.mxu0 }
 0x152   : > { %v1981_v14 = vpop.f32.mrf.mxu3  ;;  %v1988_v16 = vpop.f32.mrf.mxu2 }
 0x153   : > { %666 = vadd.xlane.f32.xlu1 %v1970_v10  ;;  %650 = vadd.xlane.f32.xlu2 %v1963_v8 }
 0x154   : > { %652 = vadd.xlane.f32.xlu0 %v1974_v12  ;;  %v1990_v17 = vpop.f32.mrf.mxu1 }
 0x15a   : > { %v1992_v18 = vpop.f32.mrf.mxu3  ;;  %v1997_v19 = vpop.f32.mrf.mxu2 }
 0x15b   : > { %620 = vadd.xlane.f32.xlu2 %v1972_v11  ;;  %636 = vadd.xlane.f32.xlu1 %v1979_v13 }
 0x15c   : > { %622 = vadd.xlane.f32.xlu0 %v1983_v15  ;;  %v2001_v21 = vpop.f32.mrf.mxu1 }
 0x162   : > { %v2006_v23 = vpop.f32.mrf.mxu3  ;;  %v2008_v25 = vpop.f32.mrf.mxu2 }
 0x163   : > { %668 = vadd.xlane.f32.xlu2 %v1981_v14  ;;  %654 = vadd.xlane.f32.xlu1 %v1988_v16 }
 0x164   : > { %670 = vadd.xlane.f32.xlu0 %v1992_v18  ;;  %v2015_v28 = vpop.f32.mrf.mxu1 }
 0x16a   : > { %v2019_v31 = vpop.f32.mrf.mxu3 }
 0x16b   : > { %624 = vadd.xlane.f32.xlu1 %v1999_v20  ;;  %638 = vadd.xlane.f32.xlu2 %v1990_v17 }
 0x16c   : > { %640 = vadd.xlane.f32.xlu0 %v2001_v21 }
 0x173   : > { %672 = vadd.xlane.f32.xlu1 %v2006_v23  ;;  %656 = vadd.xlane.f32.xlu2 %v1997_v19 }
 0x174   : > { %658 = vadd.xlane.f32.xlu0 %v2008_v25 }
 0x17b   : > { %626 = vadd.xlane.f32.xlu2 %v2013_v27  ;;  %642 = vadd.xlane.f32.xlu1 %v2015_v28 }
 0x183   : > { %674 = vadd.xlane.f32.xlu2 %v2019_v31 }
 0x188   : > { %v613_v34 = vpop.xlane.xlu2 %612 }
 0x189   : > { %v683_v35 = vmul.f32 %v2022_v33, %v613_v34 }
 0x18b   : > { %v2026_v36 = vsub.f32 %v1926_v61, %v683_v35 }
 0x18d   : > { %v747_v37 = vmul.f32 %v2026_v36, %v2026_v36 }
 0x18f   : > { %779 = vadd.xlane.f32.xlu0 %v747_v37 }
 0x19e   : > { %v645_v38 = vpop.xlane.xlu2 %644 }
 0x19f   : > { %v699_v39 = vmul.f32 %v2022_v33, %v645_v38  ;;  %v629_v40 = vpop.xlane.xlu0 %628 }
 0x1a0   : > { %v691_v41 = vmul.f32 %v2022_v33, %v629_v40 }
 0x1a1   : > { %v2033_v42 = vsub.f32 %v1929_v62, %v699_v39 }
 0x1a2   : > { %v2036_v43 = vsub.f32 %v1932_v63, %v691_v41 }
 0x1a3   : > { %v763_v44 = vmul.f32 %v2033_v42, %v2033_v42 }
 0x1a4   : > { %v755_v46 = vmul.f32 %v2036_v43, %v2036_v43 }
 0x1a5   : > { %811 = vadd.xlane.f32.xlu1 %v763_v44 }
 0x1a6   : > { %v661_v47 = vpop.xlane.xlu1 %660  ;;  %795 = vadd.xlane.f32.xlu2 %v755_v46 }
 0x1a7   : > { %v707_v48 = vmul.f32 %v2022_v33, %v661_v47  ;;  %v615_v50 = vpop.xlane.xlu0 %614 }
 0x1a8   : > { %v684_v51 = vmul.f32 %v2022_v33, %v615_v50 }
 0x1a9   : > { %v2045_v52 = vsub.f32 %v1935_v45, %v707_v48 }
 0x1aa   : > { %v2048_v53 = vsub.f32 %v1937_v49, %v684_v51 }
 0x1ab   : > { %v771_v54 = vmul.f32 %v2045_v52, %v2045_v52 }
 0x1ac   : > { %v748_v55 = vmul.f32 %v2048_v53, %v2048_v53 }
 0x1ad   : > { %827 = vadd.xlane.f32.xlu0 %v771_v54 }
 0x1ae   : > { %v631_v56 = vpop.xlane.xlu1 %630  ;;  %v663_v57 = vpop.xlane.xlu2 %662  ;;  %781 = vadd.xlane.f32.xlu1 %v748_v55 }
 0x1af   : > { %v692_v58 = vmul.f32 %v2022_v33, %v631_v56  ;;  %v708_v59 = vmul.f32 %v2022_v33, %v663_v57  ;;  %v647_v60 = vpop.xlane.xlu0 %646 }
 0x1b0   : > { %v700_v61 = vmul.f32 %v2022_v33, %v647_v60 }
 0x1b1   : > { %v2058_v62 = vsub.f32 %v1943_v1, %v692_v58  ;;  %v2061_v63 = vsub.f32 %v1945_v2, %v708_v59 }
 0x1b2   : > { %v2064_v45 = vsub.f32 %v1941_v0, %v700_v61 }
 0x1b3   : > { %v756_v49 = vmul.f32 %v2058_v62, %v2058_v62  ;;  %v772_v22 = vmul.f32 %v2061_v63, %v2061_v63 }
 0x1b4   : > { %v764_v24 = vmul.f32 %v2064_v45, %v2064_v45 }
 0x1b5   : > { %797 = vadd.xlane.f32.xlu0 %v756_v49 }
 0x1b6   : > { %v617_v26 = vpop.xlane.xlu1 %616  ;;  %v633_v29 = vpop.xlane.xlu2 %632  ;;  %829 = vadd.xlane.f32.xlu1 %v772_v22  ;;  %813 = vadd.xlane.f32.xlu2 %v764_v24 }
 0x1b7   : > { %v685_v1 = vmul.f32 %v2022_v33, %v617_v26  ;;  %v693_v2 = vmul.f32 %v2022_v33, %v633_v29  ;;  %v665_v0 = vpop.xlane.xlu0 %664 }
 0x1b8   : > { %v709_v34 = vmul.f32 %v2022_v33, %v665_v0 }
 0x1b9   : > { %v2075_v30 = vsub.f32 %v1950_v3, %v685_v1  ;;  %v2078_v32 = vsub.f32 %v1954_v5, %v693_v2 }
 0x1ba   : > { %v2087_v3 = vsub.f32 %v1956_v6, %v709_v34 }
 0x1bb   : > { %v757_v35 = vmul.f32 %v2078_v32, %v2078_v32  ;;  %v749_v37 = vmul.f32 %v2075_v30, %v2075_v30 }
 0x1bc   : > { %v773_v48 = vmul.f32 %v2087_v3, %v2087_v3 }
 0x1be   : > { %v649_v38 = vpop.xlane.xlu1 %648  ;;  %v619_v39 = vpop.xlane.xlu2 %618  ;;  %799 = vadd.xlane.f32.xlu1 %v757_v35  ;;  %783 = vadd.xlane.f32.xlu2 %v749_v37 }
 0x1bf   : > { %v701_v40 = vmul.f32 %v2022_v33, %v649_v38  ;;  %v635_v41 = vpop.xlane.xlu0 %634  ;;  %v686_v44 = vmul.f32 %v2022_v33, %v619_v39 }
 0x1c0   : > { %v694_v47 = vmul.f32 %v2022_v33, %v635_v41 }
 0x1c1   : > { %v2090_v5 = vsub.f32 %v1952_v4, %v701_v40  ;;  %v2099_v6 = vsub.f32 %v1961_v7, %v686_v44 }
 0x1c2   : > { %v2103_v55 = vsub.f32 %v1965_v9, %v694_v47 }
 0x1c3   : > { %v765_v46 = vmul.f32 %v2090_v5, %v2090_v5  ;;  %v750_v58 = vmul.f32 %v2099_v6, %v2099_v6 }
 0x1c4   : > { %v758_v60 = vmul.f32 %v2103_v55, %v2103_v55 }
 0x1c5   : > { %815 = vadd.xlane.f32.xlu0 %v765_v46 }
 0x1c6   : > { %v667_v50 = vpop.xlane.xlu1 %666  ;;  %v651_v51 = vpop.xlane.xlu2 %650  ;;  %831 = vadd.xlane.f32.xlu2 %v773_v48 }
 0x1c7   : > { %v702_v4 = vmul.f32 %v2022_v33, %v651_v51  ;;  %v653_v54 = vpop.xlane.xlu0 %652  ;;  %v710_v57 = vmul.f32 %v2022_v33, %v667_v50 }
 0x1c8   : > { %v703_v7 = vmul.f32 %v2022_v33, %v653_v54 }
 0x1c9   : > { %v2106_v56 = vsub.f32 %v1963_v8, %v702_v4  ;;  %v2117_v8 = vsub.f32 %v1970_v10, %v710_v57 }
 0x1ca   : > { %v2121_v24 = vsub.f32 %v1974_v12, %v703_v7 }
 0x1cb   : > { %v766_v59 = vmul.f32 %v2106_v56, %v2106_v56  ;;  %v774_v1 = vmul.f32 %v2117_v8, %v2117_v8 }
 0x1cc   : > { %v767_v0 = vmul.f32 %v2121_v24, %v2121_v24 }
 0x1cd   : > { %785 = vadd.xlane.f32.xlu0 %v750_v58  ;;  %817 = vadd.xlane.f32.xlu1 %v766_v59 }
 0x1ce   : > { %v621_v9 = vpop.xlane.xlu2 %620  ;;  %v637_v61 = vpop.xlane.xlu1 %636  ;;  %801 = vadd.xlane.f32.xlu2 %v758_v60 }
 0x1cf   : > { %v687_v49 = vmul.f32 %v2022_v33, %v621_v9  ;;  %v623_v22 = vpop.xlane.xlu0 %622  ;;  %v695_v29 = vmul.f32 %v2022_v33, %v637_v61 }
 0x1d0   : > { %v688_v10 = vmul.f32 %v2022_v33, %v623_v22 }
 0x1d1   : > { %v2124_v26 = vsub.f32 %v1972_v11, %v687_v49  ;;  %v2135_v11 = vsub.f32 %v1979_v13, %v695_v29 }
 0x1d2   : > { %v2139_v38 = vsub.f32 %v1983_v15, %v688_v10 }
 0x1d3   : > { %v751_v2 = vmul.f32 %v2124_v26, %v2124_v26  ;;  %v759_v41 = vmul.f32 %v2135_v11, %v2135_v11 }
 0x1d4   : > { %v752_v13 = vmul.f32 %v2139_v38, %v2139_v38 }
 0x1d5   : > { %833 = vadd.xlane.f32.xlu0 %v774_v1  ;;  %787 = vadd.xlane.f32.xlu1 %v751_v2 }
 0x1d6   : > { %v669_v12 = vpop.xlane.xlu2 %668  ;;  %v655_v34 = vpop.xlane.xlu1 %654  ;;  %819 = vadd.xlane.f32.xlu2 %v767_v0 }
 0x1d7   : > { %v711_v35 = vmul.f32 %v2022_v33, %v669_v12  ;;  %v671_v37 = vpop.xlane.xlu0 %670  ;;  %v704_v40 = vmul.f32 %v2022_v33, %v655_v34 }
 0x1d9   : > { %v2142_v39 = vsub.f32 %v1981_v14, %v711_v35  ;;  %v2152_v15 = vsub.f32 %v1988_v16, %v704_v40 }
 0x1db   : > { %v775_v44 = vmul.f32 %v2142_v39, %v2142_v39  ;;  %v768_v57 = vmul.f32 %v2152_v15, %v2152_v15 }
 0x1dd   : > { %803 = vadd.xlane.f32.xlu0 %v759_v41  ;;  %835 = vadd.xlane.f32.xlu1 %v775_v44 }
 0x1de   : > { %v625_v46 = vpop.xlane.xlu1 %624  ;;  %v639_v47 = vpop.xlane.xlu2 %638  ;;  %789 = vadd.xlane.f32.xlu2 %v752_v13 }
 0x1df   : > { %v696_v14 = vmul.f32 %v2022_v33, %v639_v47  ;;  %v641_v48 = vpop.xlane.xlu0 %640  ;;  %v689_v54 = vmul.f32 %v2022_v33, %v625_v46 }
 0x1e0   : > { %v697_v50 = vmul.f32 %v2022_v33, %v641_v48 }
 0x1e1   : > { %v2157_v51 = vsub.f32 %v1990_v17, %v696_v14  ;;  %v2170_v17 = vsub.f32 %v1999_v20, %v689_v54  ;;  %v712_v20 = vmul.f32 %v2022_v33, %v671_v37 }
 0x1e2   : > { %v2160_v4 = vsub.f32 %v2001_v21, %v697_v50 }
 0x1e3   : > { %v760_v16 = vmul.f32 %v2157_v51, %v2157_v51  ;;  %v753_v22 = vmul.f32 %v2170_v17, %v2170_v17  ;;  %v2190_v0 = vsub.f32 %v1992_v18, %v712_v20 }
 0x1e4   : > { %v761_v58 = vmul.f32 %v2160_v4, %v2160_v4 }
 0x1e5   : > { %821 = vadd.xlane.f32.xlu0 %v768_v57  ;;  %805 = vadd.xlane.f32.xlu1 %v760_v16  ;;  %v776_v41 = vmul.f32 %v2190_v0, %v2190_v0 }
 0x1e6   : > { %v673_v59 = vpop.xlane.xlu1 %672  ;;  %v657_v7 = vpop.xlane.xlu2 %656  ;;  %807 = vadd.xlane.f32.xlu2 %v761_v58  ;;  %v2221_v58 = vld [vmem:[%s2729_s2] ss:$0 sm:$0xff] }
 0x1e7   : > { %v705_v21 = vmul.f32 %v2022_v33, %v657_v7  ;;  %v659_v60 = vpop.xlane.xlu0 %658  ;;  %v713_v35 = vmul.f32 %v2022_v33, %v673_v59 }
 0x1e8   : > { %v706_v9 = vmul.f32 %v2022_v33, %v659_v60 }
 0x1e9   : > { %v2175_v61 = vsub.f32 %v1997_v19, %v705_v21  ;;  %v2226_v21 = vld [vmem:[%s2730_s3] ss:$0 sm:$0xff] }
 0x1ea   : > { %v2178_v49 = vsub.f32 %v2008_v25, %v706_v9 }
 0x1eb   : > { %v769_v29 = vmul.f32 %v2175_v61, %v2175_v61 }
 0x1ec   : > { %v770_v1 = vmul.f32 %v2178_v49, %v2178_v49 }
 0x1ed   : > { %791 = vadd.xlane.f32.xlu0 %v753_v22  ;;  %823 = vadd.xlane.f32.xlu1 %v769_v29 }
 0x1ee   : > { %v627_v2 = vpop.xlane.xlu2 %626  ;;  %v643_v10 = vpop.xlane.xlu1 %642  ;;  %825 = vadd.xlane.f32.xlu2 %v770_v1 }
 0x1ef   : > { %v690_v19 = vmul.f32 %v2022_v33, %v627_v2  ;;  %v698_v25 = vmul.f32 %v2022_v33, %v643_v10 }
 0x1f1   : > { %v2193_v12 = vsub.f32 %v2013_v27, %v690_v19  ;;  %v2196_v34 = vsub.f32 %v2015_v28, %v698_v25  ;;  %v2206_v27 = vsub.f32 %v2006_v23, %v713_v35 }
 0x1f3   : > { %v762_v37 = vmul.f32 %v2196_v34, %v2196_v34  ;;  %v754_v40 = vmul.f32 %v2193_v12, %v2193_v12  ;;  %v777_v13 = vmul.f32 %v2206_v27, %v2206_v27 }
 0x1f5   : > { %809 = vadd.xlane.f32.xlu0 %v762_v37  ;;  %793 = vadd.xlane.f32.xlu1 %v754_v40 }
 0x1f6   : > { %v675_v18 = vpop.xlane.xlu2 %674  ;;  %837 = vadd.xlane.f32.xlu2 %v776_v41 }
 0x1f7   : > { %v714_v28 = vmul.f32 %v2022_v33, %v675_v18 }
 0x1f9   : > { %v2210_v44 = vsub.f32 %v2019_v31, %v714_v28 }
 0x1fb   : > { %v778_v46 = vmul.f32 %v2210_v44, %v2210_v44 }
 0x1fd   : > { %839 = vadd.xlane.f32.xlu0 %v777_v13  ;;  %841 = vadd.xlane.f32.xlu1 %v778_v46 }
 0x202   : > { %v780_v47 = vpop.xlane.xlu0 %779 }
 0x203   : > { %v843_v14 = vmul.f32 %v780_v47, %v2022_v33 }
 0x205   : > { %v875_v48 = vadd.f32 1e-05, %v843_v14 }
 0x207   : > { %1580 = vrsqrt.f32 %v875_v48  ;;  %vm913_vm5 = vweird.f32 %v875_v48 }
 0x20d   : > { %v1581_v23 = vpop.eup %1580 }
 0x20e   : > { %v908_v50 = vmul.f32 %v1581_v23, %v875_v48  ;;  %vm914_vm4 = vweird.f32 %v1581_v23 }
 0x20f   : > { %vm915_vm6 = vmor %vm913_vm5, %vm914_vm4 }
 0x210   : > { %v909_v54 = vmul.f32 %v1581_v23, %v908_v50 }
 0x212   : > { %v910_v57 = vmul.f32 0.5, %v909_v54 }
 0x214   : > { %v911_v31 = vsub.f32 1.5, %v910_v57 }
 0x216   : > { %v912_v16 = vmul.f32 %v1581_v23, %v911_v31 }
 0x218   : > { %v916_v59 = vsel %vm915_vm6, %v1581_v23, %v912_v16  ;;  %v812_v7 = vpop.xlane.xlu1 %811 }
 0x219   : > { %v1227_v60 = vmul.f32 %v916_v59, %v2026_v36  ;;  %v859_v9 = vmul.f32 %v812_v7, %v2022_v33  ;;  %v796_v22 = vpop.xlane.xlu2 %795 }
 0x21a   : > { %v851_v29 = vmul.f32 %v796_v22, %v2022_v33 }
 0x21b   : > { %v1263_v20 = vmul.f32 %v2221_v58, %v1227_v60  ;;  %v891_v1 = vadd.f32 1e-05, %v859_v9 }
 0x21c   : > { %v883_v2 = vadd.f32 1e-05, %v851_v29 }
 0x21d   : > { %v1299_v10 = vadd.f32 %v2226_v21, %v1263_v20  ;;  %1582 = vrsqrt.f32 %v891_v1  ;;  %vm1073_vm8 = vweird.f32 %v891_v1 }
 0x21e   : > { %1584 = vrsqrt.f32 %v883_v2  ;;  %vm993_vm11 = vweird.f32 %v883_v2 }
 0x21f   : > { %1331 = vst [vmem:[%s2235_s29] sm:$0xff] %v1299_v10 }
 0x220   : > { %v828_v19 = vpop.xlane.xlu0 %827 }
 0x221   : > { %v867_v36 = vmul.f32 %v828_v19, %v2022_v33  ;;  %v782_v25 = vpop.xlane.xlu1 %781 }
 0x222   : > { %v844_v35 = vmul.f32 %v782_v25, %v2022_v33 }
 0x223   : > { %v1583_v37 = vpop.eup %1582  ;;  %v2240_v40 = vadd.f32 1e-05, %v867_v36 }
 0x224   : > { %v1585_v41 = vpop.eup %1584  ;;  %v1068_v18 = vmul.f32 %v1583_v37, %v891_v1  ;;  %v2242_v28 = vadd.f32 1e-05, %v844_v35  ;;  %vm1074_vm7 = vweird.f32 %v1583_v37 }
 0x225   : > { %v988_v13 = vmul.f32 %v1585_v41, %v883_v2  ;;  %1586 = vrsqrt.f32 %v2240_v40  ;;  %vm994_vm9 = vweird.f32 %v1585_v41  ;;  %vm1075_vm10 = vmor %vm1073_vm8, %vm1074_vm7  ;;  %vm1153_vm15 = vweird.f32 %v2240_v40 }
 0x226   : > { %v1069_v46 = vmul.f32 %v1583_v37, %v1068_v18  ;;  %1588 = vrsqrt.f32 %v2242_v28  ;;  %vm995_vm12 = vmor %vm993_vm11, %vm994_vm9  ;;  %vm923_vm1 = vweird.f32 %v2242_v28 }
 0x227   : > { %v989_v47 = vmul.f32 %v1585_v41, %v988_v13 }
 0x228   : > { %v1070_v14 = vmul.f32 0.5, %v1069_v46  ;;  %v798_v48 = vpop.xlane.xlu0 %797 }
 0x229   : > { %v990_v23 = vmul.f32 0.5, %v989_v47  ;;  %v852_v50 = vmul.f32 %v798_v48, %v2022_v33  ;;  %v830_v54 = vpop.xlane.xlu1 %829  ;;  %v814_v57 = vpop.xlane.xlu2 %813 }
 0x22a   : > { %v1071_v31 = vsub.f32 1.5, %v1070_v14  ;;  %v868_v16 = vmul.f32 %v830_v54, %v2022_v33  ;;  %v860_v10 = vmul.f32 %v814_v57, %v2022_v33 }
 0x22b   : > { %v1587_v59 = vpop.eup %1586  ;;  %v991_v7 = vsub.f32 1.5, %v990_v23  ;;  %v2248_v60 = vadd.f32 1e-05, %v852_v50 }
 0x22c   : > { %v1589_v9 = vpop.eup %1588  ;;  %v1072_v22 = vmul.f32 %v1583_v37, %v1071_v31  ;;  %v1148_v29 = vmul.f32 %v1587_v59, %v2240_v40  ;;  %v2251_v20 = vadd.f32 1e-05, %v868_v16  ;;  %v2259_v14 = vadd.f32 1e-05, %v860_v10 }
 0x22d   : > { %v992_v19 = vmul.f32 %v1585_v41, %v991_v7  ;;  %v918_v36 = vmul.f32 %v1589_v9, %v2242_v28  ;;  %1590 = vrsqrt.f32 %v2248_v60  ;;  %vm1154_vm13 = vweird.f32 %v1587_v59 }
 0x22e   : > { %v1076_v1 = vsel %vm1075_vm10, %v1583_v37, %v1072_v22  ;;  %v1149_v25 = vmul.f32 %v1587_v59, %v1148_v29  ;;  %1592 = vrsqrt.f32 %v2251_v20  ;;  %vm924_vm14 = vweird.f32 %v1589_v9  ;;  %vm1155_vm0 = vmor %vm1153_vm15, %vm1154_vm13 }
 0x22f   : > { %v1243_v35 = vmul.f32 %v1076_v1, %v2033_v42  ;;  %v996_v18 = vsel %vm995_vm12, %v1585_v41, %v992_v19  ;;  %v919_v13 = vmul.f32 %v1589_v9, %v918_v36  ;;  %1594 = vrsqrt.f32 %v2259_v14  ;;  %vm925_vm2 = vmor %vm923_vm1, %vm924_vm14 }
 0x230   : > { %v1235_v46 = vmul.f32 %v996_v18, %v2036_v43  ;;  %v1150_v47 = vmul.f32 0.5, %v1149_v25  ;;  %vm1003_vm5 = vweird.f32 %v2248_v60  ;;  %vm1163_vm7 = vweird.f32 %v2251_v20 }
 0x231   : > { %v1279_v2 = vmul.f32 %v2221_v58, %v1243_v35  ;;  %v920_v48 = vmul.f32 0.5, %v919_v13  ;;  %v800_v23 = vpop.xlane.xlu1 %799  ;;  %v784_v37 = vpop.xlane.xlu2 %783  ;;  %vm1083_vm10 = vweird.f32 %v2259_v14 }
 0x232   : > { %v1271_v50 = vmul.f32 %v2221_v58, %v1235_v46  ;;  %v1151_v54 = vsub.f32 1.5, %v1150_v47  ;;  %v853_v57 = vmul.f32 %v800_v23, %v2022_v33  ;;  %v845_v31 = vmul.f32 %v784_v37, %v2022_v33 }
 0x233   : > { %v1591_v42 = vpop.eup %1590  ;;  %v1315_v43 = vadd.f32 %v2226_v21, %v1279_v2  ;;  %v921_v41 = vsub.f32 1.5, %v920_v48 }
 0x234   : > { %v1593_v16 = vpop.eup %1592  ;;  %v1307_v7 = vadd.f32 %v2226_v21, %v1271_v50  ;;  %v1152_v22 = vmul.f32 %v1587_v59, %v1151_v54  ;;  %v998_v29 = vmul.f32 %v1591_v42, %v2248_v60  ;;  %v2274_v36 = vadd.f32 1e-05, %v853_v57 }
 0x235   : > { %1347 = vst [vmem:[%s2235_s29 + $0x80] sm:$0xff] %v1315_v43  ;;  %v922_v10 = vmul.f32 %v1589_v9, %v921_v41  ;;  %v1158_v19 = vmul.f32 %v1593_v16, %v2251_v20  ;;  %v2278_v35 = vadd.f32 1e-05, %v845_v31  ;;  %v1595_v46 = vpop.eup %1594  ;;  %vm1004_vm3 = vweird.f32 %v1591_v42 }
 0x236   : > { %1339 = vst [vmem:[%s2235_s29 + $0x40] sm:$0xff] %v1307_v7  ;;  %v1156_v1 = vsel %vm1155_vm0, %v1587_v59, %v1152_v22  ;;  %v999_v25 = vmul.f32 %v1591_v42, %v998_v29  ;;  %1596 = vrsqrt.f32 %v2274_v36  ;;  %v1078_v23 = vmul.f32 %v1595_v46, %v2259_v14  ;;  %vm1005_vm6 = vmor %vm1003_vm5, %vm1004_vm3 }
 0x237   : > { %v1251_v40 = vmul.f32 %v1156_v1, %v2045_v52  ;;  %v926_v18 = vsel %vm925_vm2, %v1589_v9, %v922_v10  ;;  %v1159_v13 = vmul.f32 %v1593_v16, %v1158_v19  ;;  %1598 = vrsqrt.f32 %v2278_v35 }
 0x238   : > { %v1228_v28 = vmul.f32 %v926_v18, %v2048_v53  ;;  %v1000_v47 = vmul.f32 0.5, %v999_v25  ;;  %v816_v2 = vpop.xlane.xlu0 %815  ;;  %vm1164_vm4 = vweird.f32 %v1593_v16  ;;  %v1079_v43 = vmul.f32 %v1595_v46, %v1078_v23 }
 0x239   : > { %v1287_v59 = vmul.f32 %v2221_v58, %v1251_v40  ;;  %v1160_v48 = vmul.f32 0.5, %v1159_v13  ;;  %v832_v37 = vpop.xlane.xlu2 %831  ;;  %v861_v50 = vmul.f32 %v816_v2, %v2022_v33  ;;  %vm1165_vm8 = vmor %vm1163_vm7, %vm1164_vm4  ;;  %vm1084_vm9 = vweird.f32 %v1595_v46 }
 0x23a   : > { %v1264_v52 = vmul.f32 %v2221_v58, %v1228_v28  ;;  %v1001_v9 = vsub.f32 1.5, %v1000_v47  ;;  %v869_v41 = vmul.f32 %v832_v37, %v2022_v33  ;;  %v1080_v10 = vmul.f32 0.5, %v1079_v43  ;;  %vm1085_vm11 = vmor %vm1083_vm10, %vm1084_vm9 }
 0x23b   : > { %v1323_v53 = vadd.f32 %v2226_v21, %v1287_v59  ;;  %v1161_v54 = vsub.f32 1.5, %v1160_v48  ;;  %v2292_v7 = vadd.f32 1e-05, %v861_v50  ;;  %vm1013_vm14 = vweird.f32 %v2274_v36 }
 0x23c   : > { %v1300_v57 = vadd.f32 %v2226_v21, %v1264_v52  ;;  %v1002_v31 = vmul.f32 %v1591_v42, %v1001_v9  ;;  %v2294_v22 = vpop.eup %1596  ;;  %v2299_v19 = vadd.f32 1e-05, %v869_v41  ;;  %v1081_v13 = vsub.f32 1.5, %v1080_v10 }
 0x23d   : > { %1355 = vst [vmem:[%s2235_s29 + $0xc0] sm:$0xff] %v1323_v53  ;;  %v1162_v29 = vmul.f32 %v1593_v16, %v1161_v54  ;;  %v2301_v1 = vpop.eup %1598  ;;  %v1008_v60 = vmul.f32 %v2294_v22, %v2274_v36  ;;  %1600 = vrsqrt.f32 %v2292_v7  ;;  %vm1014_vm12 = vweird.f32 %v2294_v22 }
 0x23e   : > { %1332 = vst [vmem:[%s2235_s29 + $0x8] sm:$0xff] %v1300_v57  ;;  %v1006_v25 = vsel %vm1005_vm6, %v1591_v42, %v1002_v31  ;;  %v928_v20 = vmul.f32 %v2301_v1, %v2278_v35  ;;  %v1082_v48 = vmul.f32 %v1595_v46, %v1081_v13  ;;  %1602 = vrsqrt.f32 %v2299_v19  ;;  %vm1015_vm15 = vmor %vm1013_vm14, %vm1014_vm12 }
 0x23f   : > { %v1236_v40 = vmul.f32 %v1006_v25, %v2058_v62  ;;  %v1166_v18 = vsel %vm1165_vm8, %v1593_v16, %v1162_v29  ;;  %v1009_v42 = vmul.f32 %v2294_v22, %v1008_v60  ;;  %vm934_vm13 = vweird.f32 %v2301_v1 }
 0x240   : > { %v1252_v28 = vmul.f32 %v1166_v18, %v2061_v63  ;;  %v818_v47 = vpop.xlane.xlu1 %817  ;;  %v786_v2 = vpop.xlane.xlu0 %785  ;;  %v929_v23 = vmul.f32 %v2301_v1, %v928_v20  ;;  %v1086_v52 = vsel %vm1085_vm11, %v1595_v46, %v1082_v48  ;;  %vm933_vm0 = vweird.f32 %v2278_v35 }
 0x241   : > { %v1272_v59 = vmul.f32 %v2221_v58, %v1236_v40  ;;  %v802_v62 = vpop.xlane.xlu2 %801  ;;  %v1010_v63 = vmul.f32 0.5, %v1009_v42  ;;  %v862_v14 = vmul.f32 %v818_v47, %v2022_v33  ;;  %v846_v50 = vmul.f32 %v786_v2, %v2022_v33  ;;  %vm935_vm1 = vmor %vm933_vm0, %vm934_vm13 }
 0x242   : > { %v1288_v16 = vmul.f32 %v2221_v58, %v1252_v28  ;;  %v930_v9 = vmul.f32 0.5, %v929_v23  ;;  %v1244_v43 = vmul.f32 %v1086_v52, %v2064_v45  ;;  %vm1093_vm2 = vweird.f32 %v2292_v7 }
 0x243   : > { %v1308_v37 = vadd.f32 %v2226_v21, %v1272_v59  ;;  %v2323_v53 = vpop.eup %1600  ;;  %v1011_v41 = vsub.f32 1.5, %v1010_v63  ;;  %v2327_v57 = vadd.f32 1e-05, %v862_v14  ;;  %v2333_v46 = vadd.f32 1e-05, %v846_v50 }
 0x244   : > { %v1324_v54 = vadd.f32 %v2226_v21, %v1288_v16  ;;  %v931_v31 = vsub.f32 1.5, %v930_v9  ;;  %v1088_v29 = vmul.f32 %v2323_v53, %v2292_v7  ;;  %v1280_v10 = vmul.f32 %v2221_v58, %v1244_v43  ;;  %v2340_v45 = vpop.eup %1602 }
 0x245   : > { %1340 = vst [vmem:[%s2235_s29 + $0x48] sm:$0xff] %v1308_v37  ;;  %v1012_v25 = vmul.f32 %v2294_v22, %v1011_v41  ;;  %1604 = vrsqrt.f32 %v2327_v57  ;;  %v1168_v13 = vmul.f32 %v2340_v45, %v2299_v19  ;;  %v854_v2 = vmul.f32 %v802_v62, %v2022_v33 }
 0x246   : > { %1356 = vst [vmem:[%s2235_s29 + $0xc8] sm:$0xff] %v1324_v54  ;;  %v932_v60 = vmul.f32 %v2301_v1, %v931_v31  ;;  %v1089_v40 = vmul.f32 %v2323_v53, %v1088_v29  ;;  %1606 = vrsqrt.f32 %v2333_v46  ;;  %v1316_v18 = vadd.f32 %v2226_v21, %v1280_v10 }
 0x247   : > { %v1016_v36 = vsel %vm1015_vm15, %v2294_v22, %v1012_v25  ;;  %v1169_v59 = vmul.f32 %v2340_v45, %v1168_v13  ;;  %vm1094_vm3 = vweird.f32 %v2323_v53  ;;  %vm1174_vm4 = vweird.f32 %v2340_v45 }
 0x248   : > { %v788_v20 = vpop.xlane.xlu1 %787  ;;  %v834_v28 = vpop.xlane.xlu0 %833  ;;  %v1237_v35 = vmul.f32 %v1016_v36, %v2078_v32  ;;  %v936_v42 = vsel %vm935_vm1, %v2301_v1, %v932_v60  ;;  %v1090_v47 = vmul.f32 0.5, %v1089_v40  ;;  %1348 = vst [vmem:[%s2235_s29 + $0x88] sm:$0xff] %v1316_v18  ;;  %v2365_v32 = vadd.f32 1e-05, %v854_v2  ;;  %vm1095_vm5 = vmor %vm1093_vm2, %vm1094_vm3 }
 0x249   : > { %v1229_v22 = vmul.f32 %v936_v42, %v2075_v30  ;;  %v847_v48 = vmul.f32 %v788_v20, %v2022_v33  ;;  %v870_v23 = vmul.f32 %v834_v28, %v2022_v33  ;;  %v820_v1 = vpop.xlane.xlu2 %819  ;;  %v1170_v30 = vmul.f32 0.5, %v1169_v59 }
 0x24a   : > { %v1273_v16 = vmul.f32 %v2221_v58, %v1237_v35  ;;  %v1091_v63 = vsub.f32 1.5, %v1090_v47  ;;  %v863_v10 = vmul.f32 %v820_v1, %v2022_v33  ;;  %vm1173_vm6 = vweird.f32 %v2299_v19 }
 0x24b   : > { %v2367_v14 = vpop.eup %1604  ;;  %v1265_v62 = vmul.f32 %v2221_v58, %v1229_v22  ;;  %v2371_v37 = vadd.f32 1e-05, %v847_v48  ;;  %v2379_v43 = vadd.f32 1e-05, %v870_v23  ;;  %v1171_v31 = vsub.f32 1.5, %v1170_v30  ;;  %vm1175_vm7 = vmor %vm1173_vm6, %vm1174_vm4 }
 0x24c   : > { %v2373_v52 = vpop.eup %1606  ;;  %v1309_v9 = vadd.f32 %v2226_v21, %v1273_v16  ;;  %v1092_v50 = vmul.f32 %v2323_v53, %v1091_v63  ;;  %v1098_v54 = vmul.f32 %v2367_v14, %v2327_v57  ;;  %1608 = vrsqrt.f32 %v2365_v32 }
 0x24d   : > { %v1301_v41 = vadd.f32 %v2226_v21, %v1265_v62  ;;  %v938_v29 = vmul.f32 %v2373_v52, %v2333_v46  ;;  %v1172_v7 = vmul.f32 %v2340_v45, %v1171_v31  ;;  %1610 = vrsqrt.f32 %v2371_v37 }
 0x24e   : > { %1341 = vst [vmem:[%s2235_s29 + $0x50] sm:$0xff] %v1309_v9  ;;  %v1096_v25 = vsel %vm1095_vm5, %v2323_v53, %v1092_v50  ;;  %v1099_v60 = vmul.f32 %v2367_v14, %v1098_v54  ;;  %vm1104_vm8 = vweird.f32 %v2367_v14  ;;  %1612 = vrsqrt.f32 %v2379_v43 }
 0x24f   : > { %1333 = vst [vmem:[%s2235_s29 + $0x10] sm:$0xff] %v1301_v41  ;;  %v1245_v40 = vmul.f32 %v1096_v25, %v2090_v5  ;;  %v939_v18 = vmul.f32 %v2373_v52, %v938_v29  ;;  %v1176_v5 = vsel %vm1175_vm7, %v2340_v45, %v1172_v7  ;;  %v2403_v28 = vadd.f32 1e-05, %v863_v10 }
 0x250   : > { %v836_v36 = vpop.xlane.xlu1 %835  ;;  %v804_v13 = vpop.xlane.xlu0 %803  ;;  %v1100_v53 = vmul.f32 0.5, %v1099_v60  ;;  %v1253_v35 = vmul.f32 %v1176_v5, %v2087_v3  ;;  %vm944_vm9 = vweird.f32 %v2373_v52  ;;  %vm1103_vm10 = vweird.f32 %v2327_v57 }
 0x251   : > { %v1281_v19 = vmul.f32 %v2221_v58, %v1245_v40  ;;  %v940_v20 = vmul.f32 0.5, %v939_v18  ;;  %v871_v47 = vmul.f32 %v836_v36, %v2022_v33  ;;  %v855_v2 = vmul.f32 %v804_v13, %v2022_v33  ;;  %v790_v16 = vpop.xlane.xlu2 %789  ;;  %vm1105_vm11 = vmor %vm1103_vm10, %vm1104_vm8 }
 0x252   : > { %v1101_v42 = vsub.f32 1.5, %v1100_v53  ;;  %1614 = vrsqrt.f32 %v2403_v28  ;;  %v2411_v48 = vpop.eup %1608  ;;  %v1289_v45 = vmul.f32 %v2221_v58, %v1253_v35  ;;  %vm943_vm12 = vweird.f32 %v2333_v46 }
 0x253   : > { %v1317_v22 = vadd.f32 %v2226_v21, %v1281_v19  ;;  %v941_v59 = vsub.f32 1.5, %v940_v20  ;;  %v2416_v3 = vadd.f32 1e-05, %v871_v47  ;;  %v2418_v63 = vpop.eup %1610  ;;  %v1018_v62 = vmul.f32 %v2411_v48, %v2365_v32  ;;  %vm945_vm14 = vmor %vm943_vm12, %vm944_vm9 }
 0x254   : > { %v1102_v23 = vmul.f32 %v2367_v14, %v1101_v42  ;;  %vm1023_vm13 = vweird.f32 %v2365_v32  ;;  %v2428_v57 = vpop.eup %1612  ;;  %v1325_v30 = vadd.f32 %v2226_v21, %v1289_v45  ;;  %v948_v50 = vmul.f32 %v2418_v63, %v2371_v37 }
 0x255   : > { %1349 = vst [vmem:[%s2235_s29 + $0x90] sm:$0xff] %v1317_v22  ;;  %v942_v1 = vmul.f32 %v2373_v52, %v941_v59  ;;  %vm953_vm15 = vweird.f32 %v2371_v37  ;;  %v2437_v46 = vadd.f32 1e-05, %v855_v2  ;;  %v1019_v31 = vmul.f32 %v2411_v48, %v1018_v62 }
 0x256   : > { %v1106_v9 = vsel %vm1105_vm11, %v2367_v14, %v1102_v23  ;;  %v1178_v29 = vmul.f32 %v2428_v57, %v2379_v43  ;;  %1357 = vst [vmem:[%s2235_s29 + $0xd0] sm:$0xff] %v1325_v30  ;;  %v949_v10 = vmul.f32 %v2418_v63, %v948_v50  ;;  %vm1183_vm0 = vweird.f32 %v2379_v43 }
 0x257   : > { %v1246_v54 = vmul.f32 %v1106_v9, %v2106_v56  ;;  %v946_v41 = vsel %vm945_vm14, %v2373_v52, %v942_v1  ;;  %1616 = vrsqrt.f32 %v2416_v3  ;;  %v1020_v60 = vmul.f32 0.5, %v1019_v31 }
 0x258   : > { %v1230_v14 = vmul.f32 %v946_v41, %v2099_v6  ;;  %v2449_v25 = vpop.eup %1614  ;;  %v1179_v52 = vmul.f32 %v2428_v57, %v1178_v29  ;;  %v848_v40 = vmul.f32 %v790_v16, %v2022_v33  ;;  %vm1024_vm1 = vweird.f32 %v2411_v48  ;;  %v806_v19 = vpop.xlane.xlu1 %805 }
 0x259   : > { %v1282_v56 = vmul.f32 %v2221_v58, %v1246_v54  ;;  %v950_v6 = vmul.f32 0.5, %v949_v10  ;;  %v1108_v18 = vmul.f32 %v2449_v25, %v2403_v28  ;;  %vm1113_vm2 = vweird.f32 %v2403_v28  ;;  %v822_v42 = vpop.xlane.xlu0 %821  ;;  %vm1025_vm5 = vmor %vm1023_vm13, %vm1024_vm1  ;;  %v808_v1 = vpop.xlane.xlu2 %807 }
 0x25a   : > { %v1266_v7 = vmul.f32 %v2221_v58, %v1230_v14  ;;  %v1021_v13 = vsub.f32 1.5, %v1020_v60  ;;  %v1180_v53 = vmul.f32 0.5, %v1179_v52  ;;  %1618 = vrsqrt.f32 %v2437_v46 }
 0x25b   : > { %v1318_v36 = vadd.f32 %v2226_v21, %v1282_v56  ;;  %v951_v20 = vsub.f32 1.5, %v950_v6  ;;  %vm954_vm3 = vweird.f32 %v2418_v63  ;;  %v1109_v35 = vmul.f32 %v2449_v25, %v1108_v18 }
 0x25c   : > { %v1302_v5 = vadd.f32 %v2226_v21, %v1266_v7  ;;  %v1022_v47 = vmul.f32 %v2411_v48, %v1021_v13  ;;  %v1181_v2 = vsub.f32 1.5, %v1180_v53  ;;  %vm1184_vm4 = vweird.f32 %v2428_v57  ;;  %vm955_vm7 = vmor %vm953_vm15, %vm954_vm3 }
 0x25d   : > { %1350 = vst [vmem:[%s2235_s29 + $0x98] sm:$0xff] %v1318_v36  ;;  %v2467_v22 = vadd.f32 1e-05, %v848_v40  ;;  %v2469_v59 = vpop.eup %1616  ;;  %v952_v45 = vmul.f32 %v2418_v63, %v951_v20  ;;  %v1110_v23 = vmul.f32 0.5, %v1109_v35  ;;  %vm1114_vm6 = vweird.f32 %v2449_v25  ;;  %vm1185_vm8 = vmor %vm1183_vm0, %vm1184_vm4 }
 0x25e   : > { %1334 = vst [vmem:[%s2235_s29 + $0x18] sm:$0xff] %v1302_v5  ;;  %v856_v16 = vmul.f32 %v806_v19, %v2022_v33  ;;  %v1026_v62 = vsel %vm1025_vm5, %v2411_v48, %v1022_v47  ;;  %v1182_v30 = vmul.f32 %v2428_v57, %v1181_v2  ;;  %v1188_v32 = vmul.f32 %v2469_v59, %v2416_v3  ;;  %vm1115_vm9 = vmor %vm1113_vm2, %vm1114_vm6 }
 0x25f   : > { %v864_v9 = vmul.f32 %v822_v42, %v2022_v33  ;;  %v1238_v50 = vmul.f32 %v1026_v62, %v2103_v55  ;;  %v956_v54 = vsel %vm955_vm7, %v2418_v63, %v952_v45  ;;  %v1111_v48 = vsub.f32 1.5, %v1110_v23 }
 0x260   : > { %1620 = vrsqrt.f32 %v2467_v22  ;;  %v1619_v37 = vpop.eup %1618  ;;  %v1231_v41 = vmul.f32 %v956_v54, %v2124_v26  ;;  %v1186_v31 = vsel %vm1185_vm8, %v2428_v57, %v1182_v30  ;;  %v1189_v29 = vmul.f32 %v2469_v59, %v1188_v32  ;;  %v824_v19 = vpop.xlane.xlu1 %823 }
 0x261   : > { %v857_v14 = vmul.f32 %v808_v1, %v2022_v33  ;;  %v1274_v55 = vmul.f32 %v2221_v58, %v1238_v50  ;;  %v1254_v63 = vmul.f32 %v1186_v31, %v2117_v8  ;;  %v1112_v10 = vmul.f32 %v2449_v25, %v1111_v48  ;;  %v792_v5 = vpop.xlane.xlu0 %791  ;;  %v826_v47 = vpop.xlane.xlu2 %825 }
 0x262   : > { %v1028_v43 = vmul.f32 %v1619_v37, %v2437_v46  ;;  %v1267_v56 = vmul.f32 %v2221_v58, %v1231_v41  ;;  %v1190_v26 = vmul.f32 0.5, %v1189_v29  ;;  %vm1194_vm10 = vweird.f32 %v2469_v59 }
 0x263   : > { %v2509_v57 = vadd.f32 1e-05, %v856_v16  ;;  %v1310_v8 = vadd.f32 %v2226_v21, %v1274_v55  ;;  %v1290_v60 = vmul.f32 %v2221_v58, %v1254_v63  ;;  %v1116_v52 = vsel %vm1115_vm9, %v2449_v25, %v1112_v10 }
 0x264   : > { %v1029_v40 = vmul.f32 %v1619_v37, %v1028_v43  ;;  %v1303_v7 = vadd.f32 %v2226_v21, %v1267_v56  ;;  %v1247_v6 = vmul.f32 %v1116_v52, %v2121_v24  ;;  %v1191_v28 = vsub.f32 1.5, %v1190_v26 }
 0x265   : > { %1622 = vrsqrt.f32 %v2509_v57  ;;  %1342 = vst [vmem:[%s2235_s29 + $0x58] sm:$0xff] %v1310_v8  ;;  %v1326_v36 = vadd.f32 %v2226_v21, %v1290_v60  ;;  %v2521_v53 = vadd.f32 1e-05, %v864_v9  ;;  %vm1193_vm11 = vweird.f32 %v2416_v3 }
 0x266   : > { %v2517_v18 = vpop.eup %1620  ;;  %v1030_v13 = vmul.f32 0.5, %v1029_v40  ;;  %1335 = vst [vmem:[%s2235_s29 + $0x20] sm:$0xff] %v1303_v7  ;;  %v1283_v25 = vmul.f32 %v2221_v58, %v1247_v6  ;;  %v1192_v20 = vmul.f32 %v2469_v59, %v1191_v28  ;;  %vm1195_vm12 = vmor %vm1193_vm11, %vm1194_vm10  ;;  %vm1034_vm13 = vweird.f32 %v1619_v37 }
 0x267   : > { %v958_v24 = vmul.f32 %v2517_v18, %v2467_v22  ;;  %1358 = vst [vmem:[%s2235_s29 + $0xd8] sm:$0xff] %v1326_v36  ;;  %1624 = vrsqrt.f32 %v2521_v53  ;;  %v2533_v42 = vadd.f32 1e-05, %v857_v14  ;;  %v865_v23 = vmul.f32 %v824_v19, %v2022_v33 }
 0x268   : > { %v1031_v35 = vsub.f32 1.5, %v1030_v13  ;;  %v1319_v2 = vadd.f32 %v2226_v21, %v1283_v25  ;;  %v1196_v45 = vsel %vm1195_vm12, %v2469_v59, %v1192_v20  ;;  %vm1033_vm14 = vweird.f32 %v2437_v46  ;;  %v794_v56 = vpop.xlane.xlu1 %793 }
 0x269   : > { %v959_v3 = vmul.f32 %v2517_v18, %v958_v24  ;;  %v1255_v16 = vmul.f32 %v1196_v45, %v2142_v39  ;;  %1626 = vrsqrt.f32 %v2533_v42  ;;  %vm1035_vm15 = vmor %vm1033_vm14, %vm1034_vm13  ;;  %v2545_v32 = vadd.f32 1e-05, %v865_v23  ;;  %v810_v26 = vpop.xlane.xlu0 %809 }
 0x26a   : > { %v1032_v1 = vmul.f32 %v1619_v37, %v1031_v35  ;;  %1351 = vst [vmem:[%s2235_s29 + $0xa0] sm:$0xff] %v1319_v2  ;;  %v849_v59 = vmul.f32 %v792_v5, %v2022_v33  ;;  %v866_v9 = vmul.f32 %v826_v47, %v2022_v33  ;;  %vm964_vm0 = vweird.f32 %v2517_v18  ;;  %v838_v35 = vpop.xlane.xlu2 %837 }
 0x26b   : > { %v2542_v62 = vpop.eup %1622  ;;  %v960_v30 = vmul.f32 0.5, %v959_v3  ;;  %v1291_v50 = vmul.f32 %v2221_v58, %v1255_v16  ;;  %1628 = vrsqrt.f32 %v2545_v32  ;;  %vm963_vm1 = vweird.f32 %v2467_v22 }
 0x26c   : > { %v1036_v54 = vsel %vm1035_vm15, %v1619_v37, %v1032_v1  ;;  %v1038_v39 = vmul.f32 %v2542_v62, %v2509_v57  ;;  %v2559_v14 = vadd.f32 1e-05, %v849_v59  ;;  %v2561_v37 = vadd.f32 1e-05, %v866_v9  ;;  %vm965_vm2 = vmor %vm963_vm1, %vm964_vm0 }
 0x26d   : > { %v1239_v46 = vmul.f32 %v1036_v54, %v2135_v11  ;;  %v961_v48 = vsub.f32 1.5, %v960_v30  ;;  %v2555_v41 = vpop.eup %1624  ;;  %v1327_v31 = vadd.f32 %v2226_v21, %v1291_v50  ;;  %vm1043_vm3 = vweird.f32 %v2509_v57 }
 0x26e   : > { %v1039_v29 = vmul.f32 %v2542_v62, %v1038_v39  ;;  %v1118_v11 = vmul.f32 %v2555_v41, %v2521_v53  ;;  %vm1123_vm4 = vweird.f32 %v2521_v53  ;;  %1630 = vrsqrt.f32 %v2559_v14 }
 0x26f   : > { %v1275_v55 = vmul.f32 %v2221_v58, %v1239_v46  ;;  %v962_v63 = vmul.f32 %v2517_v18, %v961_v48  ;;  %v2568_v10 = vpop.eup %1626  ;;  %1359 = vst [vmem:[%s2235_s29 + $0xe0] sm:$0xff] %v1327_v31  ;;  %vm1053_vm5 = vweird.f32 %v2533_v42  ;;  %vm1044_vm6 = vweird.f32 %v2542_v62 }
 0x270   : > { %v1040_v43 = vmul.f32 0.5, %v1039_v29  ;;  %v1119_v60 = vmul.f32 %v2555_v41, %v1118_v11  ;;  %v1048_v52 = vmul.f32 %v2568_v10, %v2533_v42  ;;  %1632 = vrsqrt.f32 %v2561_v37  ;;  %vm1045_vm8 = vmor %vm1043_vm3, %vm1044_vm6  ;;  %v842_v31 = vpop.xlane.xlu1 %841 }
 0x271   : > { %v1311_v8 = vadd.f32 %v2226_v21, %v1275_v55  ;;  %v966_v22 = vsel %vm965_vm2, %v2517_v18, %v962_v63  ;;  %v1629_v6 = vpop.eup %1628  ;;  %v850_v18 = vmul.f32 %v794_v56, %v2022_v33  ;;  %v858_v13 = vmul.f32 %v810_v26, %v2022_v33 }
 0x272   : > { %v1232_v40 = vmul.f32 %v966_v22, %v2139_v38  ;;  %v1041_v7 = vsub.f32 1.5, %v1040_v43  ;;  %v1120_v28 = vmul.f32 0.5, %v1119_v60  ;;  %v1049_v36 = vmul.f32 %v2568_v10, %v1048_v52 }
 0x273   : > { %1343 = vst [vmem:[%s2235_s29 + $0x60] sm:$0xff] %v1311_v8  ;;  %vm1124_vm7 = vweird.f32 %v2555_v41  ;;  %v1128_v38 = vmul.f32 %v1629_v6, %v2545_v32  ;;  %vm1054_vm9 = vweird.f32 %v2568_v10  ;;  %v2594_v24 = vadd.f32 1e-05, %v850_v18 }
 0x274   : > { %v1268_v19 = vmul.f32 %v2221_v58, %v1232_v40  ;;  %v1042_v5 = vmul.f32 %v2542_v62, %v1041_v7  ;;  %v1121_v25 = vsub.f32 1.5, %v1120_v28  ;;  %v1050_v20 = vmul.f32 0.5, %v1049_v36  ;;  %v2596_v47 = vpop.eup %1630  ;;  %vm1125_vm10 = vmor %vm1123_vm4, %vm1124_vm7 }
 0x275   : > { %v1129_v3 = vmul.f32 %v1629_v6, %v1128_v38  ;;  %v2600_v23 = vadd.f32 1e-05, %v858_v13  ;;  %v968_v30 = vmul.f32 %v2596_v47, %v2559_v14  ;;  %vm1133_vm11 = vweird.f32 %v2545_v32  ;;  %vm1055_vm12 = vmor %vm1053_vm5, %vm1054_vm9 }
 0x276   : > { %v1304_v2 = vadd.f32 %v2226_v21, %v1268_v19  ;;  %v1046_v45 = vsel %vm1045_vm8, %v2542_v62, %v1042_v5  ;;  %v1122_v16 = vmul.f32 %v2555_v41, %v1121_v25  ;;  %v1051_v1 = vsub.f32 1.5, %v1050_v20  ;;  %v2606_v59 = vpop.eup %1632 }
 0x277   : > { %v1240_v57 = vmul.f32 %v1046_v45, %v2157_v51  ;;  %v1130_v62 = vmul.f32 0.5, %v1129_v3  ;;  %1634 = vrsqrt.f32 %v2594_v24  ;;  %v872_v51 = vmul.f32 %v838_v35, %v2022_v33 }
 0x278   : > { %1336 = vst [vmem:[%s2235_s29 + $0x28] sm:$0xff] %v1304_v2  ;;  %v1126_v50 = vsel %vm1125_vm10, %v2555_v41, %v1122_v16  ;;  %v1052_v54 = vmul.f32 %v2568_v10, %v1051_v1  ;;  %v969_v39 = vmul.f32 %v2596_v47, %v968_v30  ;;  %vm1134_vm13 = vweird.f32 %v1629_v6 }
 0x279   : > { %v1276_v9 = vmul.f32 %v2221_v58, %v1240_v57  ;;  %v1248_v46 = vmul.f32 %v1126_v50, %v2152_v15  ;;  %v1131_v53 = vsub.f32 1.5, %v1130_v62  ;;  %v1138_v48 = vmul.f32 %v2606_v59, %v2561_v37  ;;  %vm1135_vm14 = vmor %vm1133_vm11, %vm1134_vm13 }
 0x27a   : > { %v1056_v29 = vsel %vm1055_vm12, %v2568_v10, %v1052_v54  ;;  %v970_v55 = vmul.f32 0.5, %v969_v39  ;;  %1636 = vrsqrt.f32 %v2600_v23  ;;  %vm974_vm15 = vweird.f32 %v2596_v47 }
 0x27b   : > { %v1312_v41 = vadd.f32 %v2226_v21, %v1276_v9  ;;  %v1284_v15 = vmul.f32 %v2221_v58, %v1248_v46  ;;  %v1241_v63 = vmul.f32 %v1056_v29, %v2160_v4  ;;  %v1132_v11 = vmul.f32 %v1629_v6, %v1131_v53  ;;  %v1644_v46 = vld [vmem:[%s2729_s2] ss:$0 sm:$0xff] }
 0x27c   : > { %v1139_v42 = vmul.f32 %v2606_v59, %v1138_v48  ;;  %v971_v43 = vsub.f32 1.5, %v970_v55  ;;  %v2637_v56 = vadd.f32 1e-05, %v872_v51  ;;  %v874_v10 = vmul.f32 %v842_v31, %v2022_v33 }
 0x27d   : > { %1344 = vst [vmem:[%s2235_s29 + $0x68] sm:$0xff] %v1312_v41  ;;  %v1635_v26 = vpop.eup %1634  ;;  %v1320_v8 = vadd.f32 %v2226_v21, %v1284_v15  ;;  %v1277_v4 = vmul.f32 %v2221_v58, %v1241_v63  ;;  %v1136_v22 = vsel %vm1135_vm14, %v1629_v6, %v1132_v11  ;;  %vm973_vm0 = vweird.f32 %v2559_v14  ;;  %v840_v14 = vpop.xlane.xlu0 %839 }
 0x27e   : > { %v1140_v60 = vmul.f32 0.5, %v1139_v42  ;;  %v1249_v52 = vmul.f32 %v1136_v22, %v2175_v61  ;;  %v972_v32 = vmul.f32 %v2596_v47, %v971_v43  ;;  %v978_v40 = vmul.f32 %v1635_v26, %v2594_v24  ;;  %vm975_vm1 = vmor %vm973_vm0, %vm974_vm15 }
 0x27f   : > { %1352 = vst [vmem:[%s2235_s29 + $0xa8] sm:$0xff] %v1320_v8  ;;  %v1313_v7 = vadd.f32 %v2226_v21, %v1277_v4  ;;  %vm1144_vm2 = vweird.f32 %v2606_v59  ;;  %1638 = vrsqrt.f32 %v2637_v56  ;;  %v2652_v13 = vadd.f32 1e-05, %v874_v10 }
 0x280   : > { %v1141_v28 = vsub.f32 1.5, %v1140_v60  ;;  %v1637_v6 = vpop.eup %1636  ;;  %v1285_v36 = vmul.f32 %v2221_v58, %v1249_v52  ;;  %v976_v61 = vsel %vm975_vm1, %v2596_v47, %v972_v32  ;;  %v979_v18 = vmul.f32 %v1635_v26, %v978_v40 }
 0x281   : > { %1345 = vst [vmem:[%s2235_s29 + $0x70] sm:$0xff] %v1313_v7  ;;  %v1233_v19 = vmul.f32 %v976_v61, %v2170_v17  ;;  %vm1143_vm3 = vweird.f32 %v2561_v37  ;;  %v1058_v38 = vmul.f32 %v1637_v6, %v2600_v23  ;;  %1640 = vrsqrt.f32 %v2652_v13 }
 0x282   : > { %v1142_v5 = vmul.f32 %v2606_v59, %v1141_v28  ;;  %v1321_v25 = vadd.f32 %v2226_v21, %v1285_v36  ;;  %vm1145_vm4 = vmor %vm1143_vm3, %vm1144_vm2  ;;  %v980_v20 = vmul.f32 0.5, %v979_v18  ;;  %v873_v17 = vmul.f32 %v840_v14, %v2022_v33 }
 0x283   : > { %v1269_v35 = vmul.f32 %v2221_v58, %v1233_v19  ;;  %v1059_v2 = vmul.f32 %v1637_v6, %v1058_v38  ;;  %vm984_vm5 = vweird.f32 %v1635_v26  ;;  %vm983_vm6 = vweird.f32 %v2594_v24 }
 0x284   : > { %v1146_v47 = vsel %vm1145_vm4, %v2606_v59, %v1142_v5  ;;  %1353 = vst [vmem:[%s2235_s29 + $0xb0] sm:$0xff] %v1321_v25  ;;  %v981_v37 = vsub.f32 1.5, %v980_v20  ;;  %v905_v1 = vadd.f32 1e-05, %v873_v17  ;;  %vm985_vm7 = vmor %vm983_vm6, %vm984_vm5  ;;  %vm1064_vm8 = vweird.f32 %v1637_v6 }
 0x285   : > { %v1250_v45 = vmul.f32 %v1146_v47, %v2178_v49  ;;  %v1639_v3 = vpop.eup %1638  ;;  %v1305_v57 = vadd.f32 %v2226_v21, %v1269_v35  ;;  %v1060_v16 = vmul.f32 0.5, %v1059_v2  ;;  %vm1063_vm9 = vweird.f32 %v2600_v23  ;;  %v1645_v23 = vld [vmem:[%s2730_s3] ss:$0 sm:$0xff] }
 0x286   : > { %v982_v62 = vmul.f32 %v1635_v26, %v981_v37  ;;  %v1198_v59 = vmul.f32 %v1639_v3, %v2637_v56  ;;  %1642 = vrsqrt.f32 %v905_v1  ;;  %vm1065_vm10 = vmor %vm1063_vm9, %vm1064_vm8  ;;  %vm1204_vm11 = vweird.f32 %v1639_v3 }
 0x287   : > { %v1286_v30 = vmul.f32 %v2221_v58, %v1250_v45  ;;  %1337 = vst [vmem:[%s2235_s29 + $0x30] sm:$0xff] %v1305_v57  ;;  %v1061_v33 = vsub.f32 1.5, %v1060_v16  ;;  %v1641_v49 = vpop.eup %1640  ;;  %vm1203_vm12 = vweird.f32 %v2637_v56  ;;  %vm1223_vm15 = vweird.f32 %v2652_v13 }
 0x288   : > { %v986_v9 = vsel %vm985_vm7, %v1635_v26, %v982_v62  ;;  %v1199_v50 = vmul.f32 %v1639_v3, %v1198_v59  ;;  %v1218_v58 = vmul.f32 %v1641_v49, %v2652_v13  ;;  %vm1205_vm13 = vmor %vm1203_vm12, %vm1204_vm11  ;;  %vm1224_vm14 = vweird.f32 %v1641_v49 }
 0x289   : > { %v1322_v51 = vadd.f32 %v2226_v21, %v1286_v30  ;;  %v1234_v54 = vmul.f32 %v986_v9, %v2193_v12  ;;  %v1062_v39 = vmul.f32 %v1637_v6, %v1061_v33  ;;  %vm1225_vm0 = vmor %vm1223_vm15, %vm1224_vm14  ;;  %vm1213_vm2 = vweird.f32 %v905_v1 }
 0x28a   : > { %v1200_v24 = vmul.f32 0.5, %v1199_v50  ;;  %v1219_v21 = vmul.f32 %v1641_v49, %v1218_v58 }
 0x28b   : > { %1354 = vst [vmem:[%s2235_s29 + $0xb8] sm:$0xff] %v1322_v51  ;;  %v1270_v53 = vmul.f32 %v1644_v46, %v1234_v54  ;;  %v1066_v48 = vsel %vm1065_vm10, %v1637_v6, %v1062_v39 }
 0x28c   : > { %v1242_v31 = vmul.f32 %v1066_v48, %v2196_v34  ;;  %v1201_v41 = vsub.f32 1.5, %v1200_v24  ;;  %v1643_v12 = vpop.eup %1642  ;;  %v1220_v55 = vmul.f32 0.5, %v1219_v21 }
 0x28d   : > { %v1306_v29 = vadd.f32 %v1645_v23, %v1270_v53  ;;  %v1208_v11 = vmul.f32 %v1643_v12, %v905_v1  ;;  %vm1214_vm1 = vweird.f32 %v1643_v12 }
 0x28e   : > { %v1278_v15 = vmul.f32 %v1644_v46, %v1242_v31  ;;  %v1202_v63 = vmul.f32 %v1639_v3, %v1201_v41  ;;  %v1221_v42 = vsub.f32 1.5, %v1220_v55  ;;  %vm1215_vm3 = vmor %vm1213_vm2, %vm1214_vm1 }
 0x28f   : > { %1338 = vst [vmem:[%s2235_s29 + $0x38] sm:$0xff] %v1306_v29  ;;  %v1209_v10 = vmul.f32 %v1643_v12, %v1208_v11 }
 0x290   : > { %v1314_v34 = vadd.f32 %v1645_v23, %v1278_v15  ;;  %v1206_v43 = vsel %vm1205_vm13, %v1639_v3, %v1202_v63  ;;  %v1222_v8 = vmul.f32 %v1641_v49, %v1221_v42 }
 0x291   : > { %v1256_v26 = vmul.f32 %v1206_v43, %v2190_v0  ;;  %v1210_v4 = vmul.f32 0.5, %v1209_v10 }
 0x292   : > { %1346 = vst [vmem:[%s2235_s29 + $0x78] sm:$0xff] %v1314_v34  ;;  %v1226_v56 = vsel %vm1225_vm0, %v1641_v49, %v1222_v8 }
 0x293   : > { %v1292_v22 = vmul.f32 %v1644_v46, %v1256_v26  ;;  %v1258_v60 = vmul.f32 %v1226_v56, %v2210_v44  ;;  %v1211_v52 = vsub.f32 1.5, %v1210_v4 }
 0x295   : > { %v1328_v32 = vadd.f32 %v1645_v23, %v1292_v22  ;;  %v1294_v40 = vmul.f32 %v1644_v46, %v1258_v60  ;;  %v1212_v0 = vmul.f32 %v1643_v12, %v1211_v52 }
 0x297   : > { %1360 = vst [vmem:[%s2235_s29 + $0xe8] sm:$0xff] %v1328_v32  ;;  %v1330_v7 = vadd.f32 %v1645_v23, %v1294_v40  ;;  %v1216_v28 = vsel %vm1215_vm3, %v1643_v12, %v1212_v0 }
 0x298   : > { %v1257_v6 = vmul.f32 %v1216_v28, %v2206_v27 }
 0x299   : > { %1362 = vst [vmem:[%s2235_s29 + $0xf8] sm:$0xff] %v1330_v7 }
 0x29a   : > { %v1293_v44 = vmul.f32 %v1644_v46, %v1257_v6 }
 0x29c   : > { %v1329_v36 = vadd.f32 %v1645_v23, %v1293_v44 }
 0x29e   : > { %1361 = vst [vmem:[%s2235_s29 + $0xf0] sm:$0xff] %v1329_v36 }
 0x29f   : > { %1673 = shalt.err (!%p1670_p3)
}
 0x2a0   : > { %s1713_s14 = smov 128   ;;  %s1714_s29 = smov 8  }
 0x2a1   : > { %1529 = dma.vmem_to_hbm [thread:$0]  (%p1778_p5), %s1377_s19, 4096, %s1379_s12, %s1364_s13, %s1713_s14, %s1713_s14, %s1714_s29  }
 0x2a2 PF: > { %p1535_p4 = scmp.ge.s32.totalorder %s1708_s18, 2  ;;  %s1393_s6 = sand.u32 1, %s1696_s15  }
 0x2a3   : > { %s1394_s7 = scalar_lea.sflag [#allocation3], %s1393_s6 }
 0x2a4   : > { %p1532_p7 = pnand %p1535_p4, %p1782_p6 }
 0x2a6   : > { %p1533_p8 = pneg %p1532_p7 }
 0x2a8   : > { %1691 = dma.done.wait (%p1533_p8), %s1394_s7, 4096  }
 0x2a9   : > { %1693 = vsyncadd (%p1533_p8), %s1394_s7, 4294963200  ;;  %p14_p9 = scmp.ge.s32.totalorder %s1765_s21, 4   ;;  %s2734_s15 = smov %s1700_s16 }
 0x2aa   : > { %s2735_s16 = smov %s1704_s17  ;;  %s2736_s17 = smov %s1776_s24 }
 0x2ab   : > { %s2737_s18 = smov %s1765_s21  ;;  %16 = sbr.rel (!%p14_p9) target bundleno = 3 (0x3), region = 71 }
 0x2b0   :  { %1400 = vsyncpa [#allocation3], 1 }
 0x2b1   :  { %1402 = vsyncpa [#allocation3 + $0x1], 1 }

</bundles_post_ra>
